<compile_context>
chip_gen: v6e
topology: v6e:2x2x1
jax: 0.10.0
libtpu: 0.0.40
codegen_flags: <defaults>
</compile_context>

<pallas_src>
import functools

import jax
import jax.numpy as jnp
from jax import lax
from jax.experimental import pallas as pl
from jax.experimental.pallas import tpu as pltpu


def _disc_mlp_kernel(real_ref, fake_ref, emb_ref,
                     w1r_ref, w1f_ref, w1e_ref, b1_ref,
                     w2_ref, b2_ref, w3t_ref, b3_ref,
                     o_ref):
    """Fused 3-layer MLP; bf16 MXU operands, f32 accumulation / elementwise."""
    f32 = jnp.float32
    bf16 = jnp.bfloat16

    # Layer 1: split-concat matmul  (TB, C)@(C, 512) x3, summed in f32.
    h1 = jnp.dot(real_ref[...], w1r_ref[...], preferred_element_type=f32)
    h1 = h1 + jnp.dot(fake_ref[...], w1f_ref[...], preferred_element_type=f32)
    h1 = h1 + jnp.dot(emb_ref[...], w1e_ref[...], preferred_element_type=f32)
    h1 = h1 + b1_ref[...]
    h1 = jnp.where(h1 > 0.0, h1, 0.2 * h1)          # LeakyReLU(0.2)
    # Dropout(0.3): identity in eval mode.

    # Layer 2: (TB, 512) @ (512, 256) + (1, 256)
    h2 = jnp.dot(h1.astype(bf16), w2_ref[...], preferred_element_type=f32)
    h2 = h2 + b2_ref[...]
    h2 = jnp.where(h2 > 0.0, h2, 0.2 * h2)          # LeakyReLU(0.2)
    # Dropout(0.3): identity in eval mode.

    # Layer 3, lane-dense: contract H2 of w3t (1, H2) with H2 of h2 (TB, H2)
    # -> (1, TB) so the output store is a full-width unmasked vst.
    logit = lax.dot_general(
        w3t_ref[...], h2.astype(bf16),
        dimension_numbers=(((1,), (1,)), ((), ())),
        preferred_element_type=f32)
    logit = logit + b3_ref[...]                      # (1, 1) broadcast
    o_ref[...] = jax.nn.sigmoid(logit).astype(o_ref.dtype)


@functools.partial(jax.jit, static_argnames=("block_b",))
def discriminator_forward(real, fake, labels, params, *, block_b=128):
    """Embedding lookup (glue) + fused Pallas MLP; returns (B, 1) float32."""
    emb_table = params["emb"]            # (C, C)
    w1, b1 = params["w1"], params["b1"]  # (3C, 512), (1, 512)
    w2, b2 = params["w2"], params["b2"]  # (512, 256), (1, 256)
    w3, b3 = params["w3"], params["b3"]  # (256, 1),  (1, 1)

    B, C = real.shape
    H1 = w1.shape[1]
    H2 = w2.shape[1]
    bf16 = jnp.bfloat16

    # Embedding gather stays in JAX (cheap glue).
    emb = emb_table[labels]                          # (B, C)

    # Split W1 rows to match the [real | fake | emb] concat order.
    w1r = w1[:C].astype(bf16)
    w1f = w1[C:2 * C].astype(bf16)
    w1e = w1[2 * C:].astype(bf16)
    w2b = w2.astype(bf16)
    w3t = w3.T.astype(bf16)                          # (1, H2) lane-dense

    # Pad batch to a multiple of the tile; padded rows are sliced off at the end.
    nb = pl.cdiv(B, block_b)
    B_pad = nb * block_b

    def prep(a):
        return jnp.pad(a.astype(bf16), ((0, B_pad - B), (0, 0)))

    real_p, fake_p, emb_p = prep(real), prep(fake), prep(emb)

    act_spec = pl.BlockSpec((block_b, C), lambda i: (i, 0))

    def full(shape):
        return pl.BlockSpec(shape, lambda i: (0, 0))

    out = pl.pallas_call(
        _disc_mlp_kernel,
        out_shape=jax.ShapeDtypeStruct((1, B_pad), jnp.float32),
        grid_spec=pltpu.PrefetchScalarGridSpec(
            num_scalar_prefetch=0,
            grid=(nb,),
            in_specs=[
                act_spec, act_spec, act_spec,          # real, fake, emb tiles
                full((C, H1)), full((C, H1)), full((C, H1)), full((1, H1)),
                full((H1, H2)), full((1, H2)),
                full((1, H2)), full((1, 1)),
            ],
            # Lane-dense output: batch runs along lanes, one row total.
            out_specs=pl.BlockSpec((1, block_b), lambda i: (0, i)),
        ),
        compiler_params=pltpu.CompilerParams(
            dimension_semantics=("parallel",)),
    )(real_p, fake_p, emb_p,
      w1r, w1f, w1e, b1,
      w2b, b2, w3t, b3)

    return out.reshape(B_pad, 1)[:B]                 # (B, 1)


def init_params(key, num_classes):
    """Deterministic parameter init matching the PyTorch module's shapes."""
    ks = jax.random.split(key, 7)
    c = num_classes
    f_in = 3 * c
    # Embedding(num_classes, num_classes): N(0, 1) like nn.Embedding default.
    emb = jax.random.normal(ks[0], (c, c), jnp.float32)

    def linear(kw, kb, fan_in, fan_out):
        bound = 1.0 / jnp.sqrt(fan_in)
        w = jax.random.uniform(kw, (fan_in, fan_out), jnp.float32, -bound, bound)
        b = jax.random.uniform(kb, (1, fan_out), jnp.float32, -bound, bound)
        return w, b

    w1, b1 = linear(ks[1], ks[2], f_in, 512)
    w2, b2 = linear(ks[3], ks[4], 512, 256)
    w3, b3 = linear(ks[5], ks[6], 256, 1)
    return dict(emb=emb, w1=w1, b1=b1, w2=w2, b2=b2, w3=w3, b3=b3)


if __name__ == "__main__":
    num_classes = 16
    batch = 200        # not a multiple of 128 -> exercises cdiv padding, 2 grid steps

    key = jax.random.PRNGKey(0)
    k_real, k_fake, k_lab, k_par = jax.random.split(key, 4)

    real = jax.random.normal(k_real, (batch, num_classes), jnp.float32)
    fake = jax.random.normal(k_fake, (batch, num_classes), jnp.float32)
    labels = jax.random.randint(k_lab, (batch,), 0, num_classes, jnp.int32)
    params = init_params(k_par, num_classes)

    out = discriminator_forward(real, fake, labels, params)   # block_b=128 default
    out = jax.block_until_ready(out)
    assert out.shape == (batch, 1)

    # Reference 1: mirrors the kernel math (bf16 matmul operands, f32 accum).
    bf = jnp.bfloat16
    f32 = jnp.float32
    C = num_classes
    emb = params["emb"][labels]
    w1, w2, w3 = params["w1"], params["w2"], params["w3"]
    h1 = (jnp.dot(real.astype(bf), w1[:C].astype(bf), preferred_element_type=f32)
          + jnp.dot(fake.astype(bf), w1[C:2 * C].astype(bf), preferred_element_type=f32)
          + jnp.dot(emb.astype(bf), w1[2 * C:].astype(bf), preferred_element_type=f32)
          + params["b1"])
    h1 = jnp.where(h1 > 0, h1, 0.2 * h1)
    h2 = jnp.dot(h1.astype(bf), w2.astype(bf), preferred_element_type=f32) + params["b2"]
    h2 = jnp.where(h2 > 0, h2, 0.2 * h2)
    ref_bf16 = jax.nn.sigmoid(
        jnp.dot(h2.astype(bf), w3.astype(bf), preferred_element_type=f32) + params["b3"])
    assert jnp.allclose(out, ref_bf16, atol=1e-3, rtol=1e-3)

    # Reference 2: full-f32 semantics of the PyTorch module (looser tolerance).
    x = jnp.concatenate([real, fake, emb], axis=1)
    g1 = x @ w1 + params["b1"]
    g1 = jnp.where(g1 > 0, g1, 0.2 * g1)
    g2 = g1 @ w2 + params["b2"]
    g2 = jnp.where(g2 > 0, g2, 0.2 * g2)
    ref_f32 = jax.nn.sigmoid(g2 @ w3 + params["b3"])
    assert jnp.allclose(out, ref_f32, atol=5e-2)

    print("KERNEL_OK")
</pallas_src>

<mosaic_0001>
module attributes {stable_mosaic.version = 11 : i64} {
  func.func @_disc_mlp_kernel(%arg0: i32, %arg1: memref<128x16xbf16, #tpu.memory_space<vmem>>, %arg2: memref<128x16xbf16, #tpu.memory_space<vmem>>, %arg3: memref<128x16xbf16, #tpu.memory_space<vmem>>, %arg4: memref<16x512xbf16, #tpu.memory_space<vmem>>, %arg5: memref<16x512xbf16, #tpu.memory_space<vmem>>, %arg6: memref<16x512xbf16, #tpu.memory_space<vmem>>, %arg7: memref<1x512xf32, #tpu.memory_space<vmem>>, %arg8: memref<512x256xbf16, #tpu.memory_space<vmem>>, %arg9: memref<1x256xf32, #tpu.memory_space<vmem>>, %arg10: memref<1x256xbf16, #tpu.memory_space<vmem>>, %arg11: memref<1x1xf32, #tpu.memory_space<vmem>>, %arg12: memref<1x128xf32, #tpu.memory_space<vmem>>) attributes {dimension_semantics = [#tpu.dimension_semantics<parallel>], iteration_bounds = array<i64: 2>, scalar_prefetch = 0 : i64, scratch_operands = 0 : i64, tpu.core_type = #tpu.core_type<tc>, window_params = [{transform_indices = @transform_0, window_bounds = array<i64: 128, 16>}, {transform_indices = @transform_1, window_bounds = array<i64: 128, 16>}, {transform_indices = @transform_2, window_bounds = array<i64: 128, 16>}, {pipeline_mode = #tpu.pipeline_mode<synchronous>, transform_indices = @transform_3, window_bounds = array<i64: 16, 512>}, {pipeline_mode = #tpu.pipeline_mode<synchronous>, transform_indices = @transform_4, window_bounds = array<i64: 16, 512>}, {pipeline_mode = #tpu.pipeline_mode<synchronous>, transform_indices = @transform_5, window_bounds = array<i64: 16, 512>}, {pipeline_mode = #tpu.pipeline_mode<synchronous>, transform_indices = @transform_6, window_bounds = array<i64: 1, 512>}, {pipeline_mode = #tpu.pipeline_mode<synchronous>, transform_indices = @transform_7, window_bounds = array<i64: 512, 256>}, {pipeline_mode = #tpu.pipeline_mode<synchronous>, transform_indices = @transform_8, window_bounds = array<i64: 1, 256>}, {pipeline_mode = #tpu.pipeline_mode<synchronous>, transform_indices = @transform_9, window_bounds = array<i64: 1, 256>}, {pipeline_mode = #tpu.pipeline_mode<synchronous>, transform_indices = @transform_10, window_bounds = array<i64: 1, 1>}, {transform_indices = @transform_11, window_bounds = array<i64: 1, 128>}]} {
    %c0 = arith.constant 0 : index
    %c0_0 = arith.constant 0 : index
    %0 = vector.load %arg1[%c0, %c0_0] : memref<128x16xbf16, #tpu.memory_space<vmem>>, vector<128x16xbf16>
    %c0_1 = arith.constant 0 : index
    %c0_2 = arith.constant 0 : index
    %1 = vector.load %arg4[%c0_1, %c0_2] : memref<16x512xbf16, #tpu.memory_space<vmem>>, vector<16x512xbf16>
    %cst = arith.constant dense<0.000000e+00> : vector<128x512xf32>
    %2 = tpu.matmul %0, %1, %cst {dimension_numbers = #tpu.dot_dimension_numbers<[1], [0], [0], [1], [0, 0, 1, 1], [], []>} : vector<128x16xbf16>, vector<16x512xbf16>, vector<128x512xf32> -> vector<128x512xf32>
    %c0_3 = arith.constant 0 : index
    %c0_4 = arith.constant 0 : index
    %3 = vector.load %arg2[%c0_3, %c0_4] : memref<128x16xbf16, #tpu.memory_space<vmem>>, vector<128x16xbf16>
    %c0_5 = arith.constant 0 : index
    %c0_6 = arith.constant 0 : index
    %4 = vector.load %arg5[%c0_5, %c0_6] : memref<16x512xbf16, #tpu.memory_space<vmem>>, vector<16x512xbf16>
    %cst_7 = arith.constant dense<0.000000e+00> : vector<128x512xf32>
    %5 = tpu.matmul %3, %4, %cst_7 {dimension_numbers = #tpu.dot_dimension_numbers<[1], [0], [0], [1], [0, 0, 1, 1], [], []>} : vector<128x16xbf16>, vector<16x512xbf16>, vector<128x512xf32> -> vector<128x512xf32>
    %6 = arith.addf %2, %5 : vector<128x512xf32>
    %c0_8 = arith.constant 0 : index
    %c0_9 = arith.constant 0 : index
    %7 = vector.load %arg3[%c0_8, %c0_9] : memref<128x16xbf16, #tpu.memory_space<vmem>>, vector<128x16xbf16>
    %c0_10 = arith.constant 0 : index
    %c0_11 = arith.constant 0 : index
    %8 = vector.load %arg6[%c0_10, %c0_11] : memref<16x512xbf16, #tpu.memory_space<vmem>>, vector<16x512xbf16>
    %cst_12 = arith.constant dense<0.000000e+00> : vector<128x512xf32>
    %9 = tpu.matmul %7, %8, %cst_12 {dimension_numbers = #tpu.dot_dimension_numbers<[1], [0], [0], [1], [0, 0, 1, 1], [], []>} : vector<128x16xbf16>, vector<16x512xbf16>, vector<128x512xf32> -> vector<128x512xf32>
    %10 = arith.addf %6, %9 : vector<128x512xf32>
    %c0_13 = arith.constant 0 : index
    %c0_14 = arith.constant 0 : index
    %11 = vector.load %arg7[%c0_13, %c0_14] : memref<1x512xf32, #tpu.memory_space<vmem>>, vector<1x512xf32>
    %12 = vector.broadcast %11 : vector<1x512xf32> to vector<128x512xf32>
    %13 = arith.addf %10, %12 : vector<128x512xf32>
    %cst_15 = arith.constant 0.000000e+00 : f32
    %14 = vector.broadcast %cst_15 : f32 to vector<128x512xf32>
    %15 = arith.cmpf ogt, %13, %14 : vector<128x512xf32>
    %cst_16 = arith.constant 2.000000e-01 : f32
    %16 = vector.broadcast %cst_16 : f32 to vector<128x512xf32>
    %17 = arith.mulf %16, %13 : vector<128x512xf32>
    %18 = arith.select %15, %13, %17 : vector<128x512xi1>, vector<128x512xf32>
    %19 = arith.truncf %18 : vector<128x512xf32> to vector<128x512xbf16>
    %c0_17 = arith.constant 0 : index
    %c0_18 = arith.constant 0 : index
    %20 = vector.load %arg8[%c0_17, %c0_18] : memref<512x256xbf16, #tpu.memory_space<vmem>>, vector<512x256xbf16>
    %cst_19 = arith.constant dense<0.000000e+00> : vector<128x256xf32>
    %21 = tpu.matmul %19, %20, %cst_19 {dimension_numbers = #tpu.dot_dimension_numbers<[1], [0], [0], [1], [0, 0, 1, 1], [], []>} : vector<128x512xbf16>, vector<512x256xbf16>, vector<128x256xf32> -> vector<128x256xf32>
    %c0_20 = arith.constant 0 : index
    %c0_21 = arith.constant 0 : index
    %22 = vector.load %arg9[%c0_20, %c0_21] : memref<1x256xf32, #tpu.memory_space<vmem>>, vector<1x256xf32>
    %23 = vector.broadcast %22 : vector<1x256xf32> to vector<128x256xf32>
    %24 = arith.addf %21, %23 : vector<128x256xf32>
    %cst_22 = arith.constant 0.000000e+00 : f32
    %25 = vector.broadcast %cst_22 : f32 to vector<128x256xf32>
    %26 = arith.cmpf ogt, %24, %25 : vector<128x256xf32>
    %cst_23 = arith.constant 2.000000e-01 : f32
    %27 = vector.broadcast %cst_23 : f32 to vector<128x256xf32>
    %28 = arith.mulf %27, %24 : vector<128x256xf32>
    %29 = arith.select %26, %24, %28 : vector<128x256xi1>, vector<128x256xf32>
    %c0_24 = arith.constant 0 : index
    %c0_25 = arith.constant 0 : index
    %30 = vector.load %arg10[%c0_24, %c0_25] : memref<1x256xbf16, #tpu.memory_space<vmem>>, vector<1x256xbf16>
    %31 = arith.truncf %29 : vector<128x256xf32> to vector<128x256xbf16>
    %cst_26 = arith.constant dense<0.000000e+00> : vector<1x128xf32>
    %32 = tpu.matmul %30, %31, %cst_26 {dimension_numbers = #tpu.dot_dimension_numbers<[1], [1], [0], [0], [0, 0, 1, 0], [], []>} : vector<1x256xbf16>, vector<128x256xbf16>, vector<1x128xf32> -> vector<1x128xf32>
    %c0_27 = arith.constant 0 : index
    %c0_28 = arith.constant 0 : index
    %33 = vector.load %arg11[%c0_27, %c0_28] : memref<1x1xf32, #tpu.memory_space<vmem>>, vector<1x1xf32>
    %34 = vector.broadcast %33 : vector<1x1xf32> to vector<1x128xf32>
    %35 = arith.addf %32, %34 : vector<1x128xf32>
    %36 = arith.negf %35 : vector<1x128xf32>
    %37 = math.exp %36 : vector<1x128xf32>
    %cst_29 = arith.constant 1.000000e+00 : f32
    %38 = vector.broadcast %cst_29 : f32 to vector<1x128xf32>
    %39 = arith.addf %38, %37 : vector<1x128xf32>
    %40 = arith.divf %38, %39 : vector<1x128xf32>
    %c0_30 = arith.constant 0 : index
    %c0_31 = arith.constant 0 : index
    %41 = vector.load %arg12[%c0_30, %c0_31] : memref<1x128xf32, #tpu.memory_space<vmem>>, vector<1x128xf32>
    tpu.vector_store %arg12[%c0_30, %c0_31], %40 {strides = array<i32>} : memref<1x128xf32, #tpu.memory_space<vmem>>, vector<1x128xf32>,
    return
  }
  func.func @transform_0(%arg0: i32) -> (i32, i32) {
    %c0_i32 = arith.constant 0 : i32
    %c0_i32_0 = arith.constant 0 : i32
    return %arg0, %c0_i32 : i32, i32
  }
  func.func @transform_1(%arg0: i32) -> (i32, i32) {
    %c0_i32 = arith.constant 0 : i32
    %c0_i32_0 = arith.constant 0 : i32
    return %arg0, %c0_i32 : i32, i32
  }
  func.func @transform_2(%arg0: i32) -> (i32, i32) {
    %c0_i32 = arith.constant 0 : i32
    %c0_i32_0 = arith.constant 0 : i32
    return %arg0, %c0_i32 : i32, i32
  }
  func.func @transform_3(%arg0: i32) -> (i32, i32) {
    %c0_i32 = arith.constant 0 : i32
    %c0_i32_0 = arith.constant 0 : i32
    %c0_i32_1 = arith.constant 0 : i32
    return %c0_i32, %c0_i32_0 : i32, i32
  }
  func.func @transform_4(%arg0: i32) -> (i32, i32) {
    %c0_i32 = arith.constant 0 : i32
    %c0_i32_0 = arith.constant 0 : i32
    %c0_i32_1 = arith.constant 0 : i32
    return %c0_i32, %c0_i32_0 : i32, i32
  }
  func.func @transform_5(%arg0: i32) -> (i32, i32) {
    %c0_i32 = arith.constant 0 : i32
    %c0_i32_0 = arith.constant 0 : i32
    %c0_i32_1 = arith.constant 0 : i32
    return %c0_i32, %c0_i32_0 : i32, i32
  }
  func.func @transform_6(%arg0: i32) -> (i32, i32) {
    %c0_i32 = arith.constant 0 : i32
    %c0_i32_0 = arith.constant 0 : i32
    %c0_i32_1 = arith.constant 0 : i32
    return %c0_i32, %c0_i32_0 : i32, i32
  }
  func.func @transform_7(%arg0: i32) -> (i32, i32) {
    %c0_i32 = arith.constant 0 : i32
    %c0_i32_0 = arith.constant 0 : i32
    %c0_i32_1 = arith.constant 0 : i32
    return %c0_i32, %c0_i32_0 : i32, i32
  }
  func.func @transform_8(%arg0: i32) -> (i32, i32) {
    %c0_i32 = arith.constant 0 : i32
    %c0_i32_0 = arith.constant 0 : i32
    %c0_i32_1 = arith.constant 0 : i32
    return %c0_i32, %c0_i32_0 : i32, i32
  }
  func.func @transform_9(%arg0: i32) -> (i32, i32) {
    %c0_i32 = arith.constant 0 : i32
    %c0_i32_0 = arith.constant 0 : i32
    %c0_i32_1 = arith.constant 0 : i32
    return %c0_i32, %c0_i32_0 : i32, i32
  }
  func.func @transform_10(%arg0: i32) -> (i32, i32) {
    %c0_i32 = arith.constant 0 : i32
    %c0_i32_0 = arith.constant 0 : i32
    %c0_i32_1 = arith.constant 0 : i32
    return %c0_i32, %c0_i32_0 : i32, i32
  }
  func.func @transform_11(%arg0: i32) -> (i32, i32) {
    %c0_i32 = arith.constant 0 : i32
    %c0_i32_0 = arith.constant 0 : i32
    return %c0_i32, %arg0 : i32, i32
  }
}

</mosaic_0001>

<bundles_post_ra>
// kernel: discriminator_forward.1
= control target key start
LH: loop header
LB: loop body
LE: loop exit
PB: predicated region body
PF: predicated region fallthrough
CT: control target
= control target key end

     0   :  { %s3074_s19 = smov 0   ;;  %s4458_s0 = inlined_call_operand.vmem [shape: bf16[256,16], index: 0, kind: input, shape index: {}]   ;;  %s4459_s1 = inlined_call_operand.vmem [shape: bf16[256,16], index: 1, kind: input, shape index: {}]   ;;  %s4460_s2 = inlined_call_operand.vmem [shape: bf16[256,16], index: 2, kind: input, shape index: {}]   ;;  %s4461_s3 = inlined_call_operand.vmem [shape: bf16[16,512], index: 3, kind: input, shape index: {}]   ;;  %s4462_s4 = inlined_call_operand.vmem [shape: bf16[16,512], index: 4, kind: input, shape index: {}]   ;;  %s4463_s5 = inlined_call_operand.vmem [shape: bf16[16,512], index: 5, kind: input, shape index: {}]   ;;  %s4464_s6 = inlined_call_operand.vmem [shape: f32[1,512], index: 6, kind: input, shape index: {}]   ;;  %s4465_s7 = inlined_call_operand.vmem [shape: bf16[512,256], index: 7, kind: input, shape index: {}]   ;;  %s4466_s8 = inlined_call_operand.vmem [shape: f32[1,256], index: 8, kind: input, shape index: {}]   ;;  %s4467_s9 = inlined_call_operand.vmem [shape: bf16[1,256], index: 9, kind: input, shape index: {}]   ;;  %s4468_s10 = inlined_call_operand.<no memory space> [shape: f32[1,1], index: 10, kind: input, shape index: {}]   ;;  %s4469_s11 = inlined_call_operand.vmem [shape: f32[1,256], index: 11, kind: output, shape index: {}]  }
   0x1   :  { %v16_v0 = vstv %s4468_s10 }
   0x2   :  { %17 = vst [vmem:[#allocation2] sm:$0x1] %v16_v0 }
   0x3 LB: > { %s3080_s20 = sadd.s32 4294967295, %s3007_s19   ;;  %p2689_p0 = scmp.ge.s32.totalorder %s3007_s19, 1  ;;  %s3007_s19 = sphi %s3074_s19, %s23_s19  }
   0x4   : > { %p362_p1 = scmp.lt.s32.totalorder %s3007_s19, 3 }
   0x6   : > { %p363_p2 = pnand %p2689_p0, %p362_p1 }
   0x8   : > { %366 = sbr.rel (%p363_p2) target bundleno = 940 (0x3ac), region = 64 }
   0xd   : > { %v2859_v1 = vld [vmem:[%s4462_s4 + $0x4] ss:$16 sps:$4 sm:$0xff]   ;;  %s2690_s10 = sshll.u32 %s3080_s20, 4  ;;  %v2861_v2 = vld [vmem:[%s4462_s4 + $0xc] ss:$16 sps:$4 sm:$0xff]   ;;  %v3009_v3 = vmov 0  }
   0xe   : > { %589 = vmatprep.mubr.bf16.mxu0 %v3009_v3  ;;  %702 = vmatprep.mubr.bf16.mxu1 %v3009_v3  ;;  %p411_p3 = scmp.lt.s32.totalorder %s2690_s10, 31  ;;  %v2863_v4 = vld [vmem:[%s4462_s4] ss:$16 sps:$4 sm:$0xff]   ;;  %v2864_v5 = vld [vmem:[%s4462_s4 + $0x8] ss:$16 sps:$4 sm:$0xff]   ;;  %vm532_vm0 = vcmask 130048  }
   0xf   : > { %571 = vmatprep.subr.bf16.mxu0 %v2859_v1  ;;  %2858 = vset.pattern.permute.xlu0 %v3009_v3  ;;  %v2868_v6 = vld [vmem:[%s4461_s3 + $0x4] ss:$16 sps:$4 sm:$0xff]   ;;  %v2871_v7 = vld [vmem:[%s4461_s3 + $0xc] ss:$16 sps:$4 sm:$0xff]   ;;  %v2866_v8 = vld [vmem:[%s4461_s3] ss:$16 sps:$4 sm:$0xff]  }
  0x10   : > { %684 = vmatprep.subr.bf16.mxu1 %v2861_v2  ;;  %s4598_s10 = smov (!%p411_p3, %s2690_s10), 31  ;;  %572 = vmatpush1.bf16.msra.mxu0 %v2863_v4  ;;  %v2869_v9 = vld [vmem:[%s4461_s3 + $0x8] ss:$16 sps:$4 sm:$0xff]   ;;  %v2882_v11 = vld [vmem:[%s4463_s5 + $0x4] ss:$16 sps:$4 sm:$0xff]   ;;  %p428_p4 = scmp.lt.s32.totalorder %s3080_s20, 1 }
  0x11   : > { %685 = vmatpush1.bf16.msra.mxu1 %v2864_v5  ;;  %s2691_s12 = sshll.u32 %s4598_s10, 2  ;;  %881 = vmatprep.subr.bf16.mxu0 %v2868_v6  ;;  %v2885_v13 = vld [vmem:[%s4463_s5 + $0xc] ss:$16 sps:$4 sm:$0xff]   ;;  %v2880_v21 = vld [vmem:[%s4463_s5] ss:$16 sps:$4 sm:$0xff]  }
  0x12   : > { %s3109_s17 = scalar_lea.vmem %s4459_s1, %s2691_s12  ;;  %994 = vmatprep.subr.bf16.mxu1 %v2871_v7  ;;  %s3129_s27 = scalar_lea.vmem %s4458_s0, %s2691_s12  ;;  %v2883_v22 = vld [vmem:[%s4463_s5 + $0x8] ss:$16 sps:$4 sm:$0xff]   ;;  %v2903_v33 = vld [vmem:[%s4465_s7 + $0x74] ss:$8 sps:$4 sm:$0xff]   ;;  %v2909_v37 = vld [vmem:[%s4465_s7 + $0x64] ss:$8 sps:$4 sm:$0xff]  }
  0x13   : > { %v2865_v10 = vld [vmem:[%s3109_s17] sm:$0xff]   ;;  %v2872_v12 = vld [vmem:[%s3109_s17 + $0x8] sm:$0xff]   ;;  %v2873_v14 = vld [vmem:[%s3109_s17 + $0x10] sm:$0xff]   ;;  %s3142_s14 = scalar_lea.vmem %s4460_s2, %s2691_s12  ;;  %s4600_s20 = smov (!%p428_p4, %s3080_s20), 1 }
  0x14   : > { %2708 = vmatmul.mubr.msk.bf16.vlgmr.msra.gmra.mxu0 %vm532_vm0, %v2865_v10  ;;  %2716 = vmatmul.mubr.msk.bf16.vlgmr.msra.gmra.mxu1 %vm532_vm0, %v2865_v10  ;;  %v2874_v15 = vld [vmem:[%s3109_s17 + $0x18] sm:$0xff]   ;;  %v2875_v16 = vld [vmem:[%s3109_s17 + $0x20] sm:$0xff]   ;;  %v2876_v17 = vld [vmem:[%s3109_s17 + $0x28] sm:$0xff]   ;;  %s430_s15 = scalar_lea.vmem %s4469_s11, %s4600_s20 }
  0x15   : > { %882 = vmatpush1.bf16.msra.mxu0 %v2866_v8  ;;  %995 = vmatpush1.bf16.msra.mxu1 %v2869_v9  ;;  %v2877_v18 = vld [vmem:[%s3109_s17 + $0x30] sm:$0xff]   ;;  %v2878_v19 = vld [vmem:[%s3109_s17 + $0x38] sm:$0xff]   ;;  %v2879_v20 = vld [vmem:[%s3129_s27] sm:$0xff]  }
  0x16   : > { %599 = vmatprep.mubr.bf16.mxu0 %v3009_v3  ;;  %712 = vmatprep.mubr.bf16.mxu1 %v3009_v3  ;;  %v2886_v23 = vld [vmem:[%s3129_s27 + $0x8] sm:$0xff]   ;;  %v2887_v24 = vld [vmem:[%s3129_s27 + $0x10] sm:$0xff]   ;;  %v2888_v25 = vld [vmem:[%s3129_s27 + $0x18] sm:$0xff]  }
  0x17   : > { %1211 = vmatprep.subr.bf16.mxu0 %v2882_v11  ;;  %1324 = vmatprep.subr.bf16.mxu1 %v2885_v13  ;;  %v2889_v26 = vld [vmem:[%s3129_s27 + $0x20] sm:$0xff]   ;;  %v2890_v27 = vld [vmem:[%s3129_s27 + $0x28] sm:$0xff]   ;;  %v2891_v28 = vld [vmem:[%s3129_s27 + $0x30] sm:$0xff]  }
  0x18   : > { %v2892_v29 = vld [vmem:[%s3129_s27 + $0x38] sm:$0xff]   ;;  %v2893_v30 = vld [vmem:[%s3142_s14] sm:$0xff]   ;;  %v2894_v31 = vld [vmem:[%s3142_s14 + $0x8] sm:$0xff]  }
  0x19   : > { %v2895_v32 = vld [vmem:[%s3142_s14 + $0x10] sm:$0xff]   ;;  %v2912_v38 = vld [vmem:[%s4465_s7 + $0x164] ss:$8 sps:$4 sm:$0xff]   ;;  %v2896_v39 = vld [vmem:[%s3142_s14 + $0x18] sm:$0xff]  }
  0x1a   : > { %v2906_v34 = vld [vmem:[%s4465_s7 + $0x174] ss:$8 sps:$4 sm:$0xff]   ;;  %v2901_v35 = vld [vmem:[%s4465_s7 + $0x70] ss:$8 sps:$4 sm:$0xff]   ;;  %v2907_v40 = vld [vmem:[%s4465_s7 + $0x60] ss:$8 sps:$4 sm:$0xff]  }
  0x1b   : > { %v2904_v36 = vld [vmem:[%s4465_s7 + $0x170] ss:$8 sps:$4 sm:$0xff]   ;;  %v2910_v41 = vld [vmem:[%s4465_s7 + $0x160] ss:$8 sps:$4 sm:$0xff]   ;;  %v2915_v42 = vld [vmem:[%s4465_s7 + $0x54] ss:$8 sps:$4 sm:$0xff]  }
  0x1c   : > { %2709 = vmatmul.mubr.msk.bf16.gmra.mxu0 %vm532_vm0, %v2872_v12  ;;  %2717 = vmatmul.mubr.msk.bf16.gmra.mxu1 %vm532_vm0, %v2872_v12  ;;  %v2918_v43 = vld [vmem:[%s4465_s7 + $0x154] ss:$8 sps:$4 sm:$0xff]   ;;  %v2913_v44 = vld [vmem:[%s4465_s7 + $0x50] ss:$8 sps:$4 sm:$0xff]   ;;  %v2921_v46 = vld [vmem:[%s4465_s7 + $0x44] ss:$8 sps:$4 sm:$0xff]  }
  0x1d   : > { %609 = vmatprep.mubr.bf16.mxu0 %v3009_v3  ;;  %722 = vmatprep.mubr.bf16.mxu1 %v3009_v3  ;;  %v2916_v45 = vld [vmem:[%s4465_s7 + $0x150] ss:$8 sps:$4 sm:$0xff]   ;;  %v2924_v47 = vld [vmem:[%s4465_s7 + $0x144] ss:$8 sps:$4 sm:$0xff]   ;;  %v2919_v49 = vld [vmem:[%s4465_s7 + $0x40] ss:$8 sps:$4 sm:$0xff]  }
  0x1e   : > { %v2897_v48 = vld [vmem:[%s3142_s14 + $0x20] sm:$0xff]   ;;  %v2927_v51 = vld [vmem:[%s4465_s7 + $0x34] ss:$8 sps:$4 sm:$0xff]   ;;  %v2925_v53 = vld [vmem:[%s4465_s7 + $0x30] ss:$8 sps:$4 sm:$0xff]  }
  0x1f   : > { %v2922_v50 = vld [vmem:[%s4465_s7 + $0x140] ss:$8 sps:$4 sm:$0xff]   ;;  %v2930_v52 = vld [vmem:[%s4465_s7 + $0x134] ss:$8 sps:$4 sm:$0xff]   ;;  %v2928_v54 = vld [vmem:[%s4465_s7 + $0x130] ss:$8 sps:$4 sm:$0xff]  }
  0x20   : > { %v2933_v55 = vld [vmem:[%s4465_s7 + $0x24] ss:$8 sps:$4 sm:$0xff]   ;;  %v2931_v58 = vld [vmem:[%s4465_s7 + $0x20] ss:$8 sps:$4 sm:$0xff]   ;;  %v2939_v60 = vld [vmem:[%s4465_s7 + $0x14] ss:$8 sps:$4 sm:$0xff]  }
  0x21   : > { %v2936_v56 = vld [vmem:[%s4465_s7 + $0x124] ss:$8 sps:$4 sm:$0xff]   ;;  %v2934_v59 = vld [vmem:[%s4465_s7 + $0x120] ss:$8 sps:$4 sm:$0xff]   ;;  %v2942_v61 = vld [vmem:[%s4465_s7 + $0x114] ss:$8 sps:$4 sm:$0xff]  }
  0x22   : > { %v2898_v57 = vld [vmem:[%s3142_s14 + $0x28] sm:$0xff]   ;;  %v2937_v62 = vld [vmem:[%s4465_s7 + $0x10] ss:$8 sps:$4 sm:$0xff]   ;;  %v2951_v6 = vld [vmem:[%s4465_s7 + $0xf4] ss:$8 sps:$4 sm:$0xff]  }
  0x23   : > { %v2940_v63 = vld [vmem:[%s4465_s7 + $0x110] ss:$8 sps:$4 sm:$0xff]   ;;  %v2945_v0 = vld [vmem:[%s4465_s7 + $0x4] ss:$8 sps:$4 sm:$0xff]   ;;  %v2943_v4 = vld [vmem:[%s4465_s7] ss:$8 sps:$4 sm:$0xff]  }
  0x24   : > { %2710 = vmatmul.mubr.msk.bf16.gmra.mxu0 %vm532_vm0, %v2873_v14  ;;  %2718 = vmatmul.mubr.msk.bf16.gmra.mxu1 %vm532_vm0, %v2873_v14  ;;  %v2948_v1 = vld [vmem:[%s4465_s7 + $0x104] ss:$8 sps:$4 sm:$0xff]   ;;  %v2899_v2 = vld [vmem:[%s3142_s14 + $0x30] sm:$0xff]   ;;  %v2946_v5 = vld [vmem:[%s4465_s7 + $0x100] ss:$8 sps:$4 sm:$0xff]  }
  0x25   : > { %619 = vmatprep.mubr.bf16.mxu0 %v3009_v3  ;;  %732 = vmatprep.mubr.bf16.mxu1 %v3009_v3  ;;  %v2954_v7 = vld [vmem:[%s4465_s7 + $0x1f4] ss:$8 sps:$4 sm:$0xff]   ;;  %v2949_v8 = vld [vmem:[%s4465_s7 + $0xf0] ss:$8 sps:$4 sm:$0xff]   ;;  %v2957_v10 = vld [vmem:[%s4465_s7 + $0xe4] ss:$8 sps:$4 sm:$0xff]  }
  0x26   : > { %v2952_v9 = vld [vmem:[%s4465_s7 + $0x1f0] ss:$8 sps:$4 sm:$0xff]   ;;  %v2960_v11 = vld [vmem:[%s4465_s7 + $0x1e4] ss:$8 sps:$4 sm:$0xff]   ;;  %v2955_v13 = vld [vmem:[%s4465_s7 + $0xe0] ss:$8 sps:$4 sm:$0xff]  }
  0x27   : > { %v2900_v12 = vld [vmem:[%s3142_s14 + $0x38] sm:$0xff]  }
  0x28   : > { %v2963_v14 = vld [vmem:[%s4465_s7 + $0xd4] ss:$8 sps:$4 sm:$0xff]  }
  0x2c   : > { %2711 = vmatmul.mubr.msk.bf16.gmra.mxu0 %vm532_vm0, %v2874_v15  ;;  %2719 = vmatmul.mubr.msk.bf16.gmra.mxu1 %vm532_vm0, %v2874_v15  ;;  %v2966_v15 = vld [vmem:[%s4465_s7 + $0x1d4] ss:$8 sps:$4 sm:$0xff]  }
  0x2d   : > { %629 = vmatprep.mubr.bf16.mxu0 %v3009_v3  ;;  %742 = vmatprep.mubr.bf16.mxu1 %v3009_v3 }
  0x34   : > { %2712 = vmatmul.mubr.msk.bf16.gmra.mxu0 %vm532_vm0, %v2875_v16  ;;  %2720 = vmatmul.mubr.msk.bf16.gmra.mxu1 %vm532_vm0, %v2875_v16  ;;  %v2961_v16 = vld [vmem:[%s4465_s7 + $0xd0] ss:$8 sps:$4 sm:$0xff]  }
  0x35   : > { %639 = vmatprep.mubr.bf16.mxu0 %v3009_v3  ;;  %752 = vmatprep.mubr.bf16.mxu1 %v3009_v3 }
  0x3c   : > { %2713 = vmatmul.mubr.msk.bf16.gmra.mxu0 %vm532_vm0, %v2876_v17  ;;  %2721 = vmatmul.mubr.msk.bf16.gmra.mxu1 %vm532_vm0, %v2876_v17  ;;  %v2964_v17 = vld [vmem:[%s4465_s7 + $0x1d0] ss:$8 sps:$4 sm:$0xff]  }
  0x3d   : > { %649 = vmatprep.mubr.bf16.mxu0 %v3009_v3  ;;  %762 = vmatprep.mubr.bf16.mxu1 %v3009_v3 }
  0x44   : > { %2714 = vmatmul.mubr.msk.bf16.gmra.mxu0 %vm532_vm0, %v2877_v18  ;;  %2722 = vmatmul.mubr.msk.bf16.gmra.mxu1 %vm532_vm0, %v2877_v18  ;;  %v2969_v18 = vld [vmem:[%s4465_s7 + $0xc4] ss:$8 sps:$4 sm:$0xff]  }
  0x45   : > { %659 = vmatprep.mubr.bf16.mxu0 %v3009_v3  ;;  %772 = vmatprep.mubr.bf16.mxu1 %v3009_v3 }
  0x4c   : > { %2715 = vmatmul.mubr.msk.bf16.gmra.mxu0 %vm532_vm0, %v2878_v19  ;;  %2723 = vmatmul.mubr.msk.bf16.gmra.mxu1 %vm532_vm0, %v2878_v19  ;;  %v2972_v19 = vld [vmem:[%s4465_s7 + $0x1c4] ss:$8 sps:$4 sm:$0xff]  }
  0x4d   : > { %899 = vmatprep.mubr.bf16.mxu0 %v3009_v3  ;;  %1012 = vmatprep.mubr.bf16.mxu1 %v3009_v3 }
  0x54   : > { %2736 = vmatmul.mubr.msk.bf16.vlgmr.msra.gmra.mxu0 %vm532_vm0, %v2879_v20  ;;  %2744 = vmatmul.mubr.msk.bf16.vlgmr.msra.gmra.mxu1 %vm532_vm0, %v2879_v20  ;;  %v2967_v20 = vld [vmem:[%s4465_s7 + $0xc0] ss:$8 sps:$4 sm:$0xff]  }
  0x55   : > { %1212 = vmatpush1.bf16.msra.mxu0 %v2880_v21  ;;  %1325 = vmatpush1.bf16.msra.mxu1 %v2883_v22  ;;  %v2970_v21 = vld [vmem:[%s4465_s7 + $0x1c0] ss:$8 sps:$4 sm:$0xff]   ;;  %v2975_v22 = vld [vmem:[%s4465_s7 + $0xb4] ss:$8 sps:$4 sm:$0xff]  }
  0x56   : > { %909 = vmatprep.mubr.bf16.mxu0 %v3009_v3  ;;  %1022 = vmatprep.mubr.bf16.mxu1 %v3009_v3 }
  0x57   : > { %2193 = vmatprep.subr.bf16.mxu0 %v2903_v33  ;;  %2306 = vmatprep.subr.bf16.mxu1 %v2906_v34  ;;  %v2984_v33 = vld [vmem:[%s4465_s7 + $0x1a4] ss:$8 sps:$4 sm:$0xff]  }
  0x5c   : > { %2737 = vmatmul.mubr.msk.bf16.gmra.mxu0 %vm532_vm0, %v2886_v23  ;;  %2745 = vmatmul.mubr.msk.bf16.gmra.mxu1 %vm532_vm0, %v2886_v23  ;;  %v2978_v23 = vld [vmem:[%s4465_s7 + $0x1b4] ss:$8 sps:$4 sm:$0xff]  }
  0x5d   : > { %919 = vmatprep.mubr.bf16.mxu0 %v3009_v3  ;;  %1032 = vmatprep.mubr.bf16.mxu1 %v3009_v3 }
  0x64   : > { %2738 = vmatmul.mubr.msk.bf16.gmra.mxu0 %vm532_vm0, %v2887_v24  ;;  %2746 = vmatmul.mubr.msk.bf16.gmra.mxu1 %vm532_vm0, %v2887_v24 }
  0x65   : > { %929 = vmatprep.mubr.bf16.mxu0 %v3009_v3  ;;  %1042 = vmatprep.mubr.bf16.mxu1 %v3009_v3 }
  0x6c   : > { %2739 = vmatmul.mubr.msk.bf16.gmra.mxu0 %vm532_vm0, %v2888_v25  ;;  %2747 = vmatmul.mubr.msk.bf16.gmra.mxu1 %vm532_vm0, %v2888_v25 }
  0x6d   : > { %939 = vmatprep.mubr.bf16.mxu0 %v3009_v3  ;;  %1052 = vmatprep.mubr.bf16.mxu1 %v3009_v3 }
  0x74   : > { %2740 = vmatmul.mubr.msk.bf16.gmra.mxu0 %vm532_vm0, %v2889_v26  ;;  %2748 = vmatmul.mubr.msk.bf16.gmra.mxu1 %vm532_vm0, %v2889_v26  ;;  %v2973_v26 = vld [vmem:[%s4465_s7 + $0xb0] ss:$8 sps:$4 sm:$0xff]  }
  0x75   : > { %949 = vmatprep.mubr.bf16.mxu0 %v3009_v3  ;;  %1062 = vmatprep.mubr.bf16.mxu1 %v3009_v3 }
  0x7c   : > { %2741 = vmatmul.mubr.msk.bf16.gmra.mxu0 %vm532_vm0, %v2890_v27  ;;  %2749 = vmatmul.mubr.msk.bf16.gmra.mxu1 %vm532_vm0, %v2890_v27  ;;  %v2976_v27 = vld [vmem:[%s4465_s7 + $0x1b0] ss:$8 sps:$4 sm:$0xff]  }
  0x7d   : > { %959 = vmatprep.mubr.bf16.mxu0 %v3009_v3  ;;  %1072 = vmatprep.mubr.bf16.mxu1 %v3009_v3 }
  0x84   : > { %2742 = vmatmul.mubr.msk.bf16.gmra.mxu0 %vm532_vm0, %v2891_v28  ;;  %2750 = vmatmul.mubr.msk.bf16.gmra.mxu1 %vm532_vm0, %v2891_v28 }
  0x85   : > { %969 = vmatprep.mubr.bf16.mxu0 %v3009_v3  ;;  %1082 = vmatprep.mubr.bf16.mxu1 %v3009_v3 }
  0x8c   : > { %2743 = vmatmul.mubr.msk.bf16.gmra.mxu0 %vm532_vm0, %v2892_v29  ;;  %2751 = vmatmul.mubr.msk.bf16.gmra.mxu1 %vm532_vm0, %v2892_v29 }
  0x8d   : > { %1229 = vmatprep.mubr.bf16.mxu0 %v3009_v3  ;;  %1342 = vmatprep.mubr.bf16.mxu1 %v3009_v3 }
  0x94   : > { %2764 = vmatmul.mubr.msk.bf16.vlgmr.msra.gmra.mxu0 %vm532_vm0, %v2893_v30  ;;  %2772 = vmatmul.mubr.msk.bf16.vlgmr.msra.gmra.mxu1 %vm532_vm0, %v2893_v30 }
  0x95   : > { %1239 = vmatprep.mubr.bf16.mxu0 %v3009_v3  ;;  %1352 = vmatprep.mubr.bf16.mxu1 %v3009_v3 }
  0x96   : > { %2194 = vmatpush1.bf16.msra.mxu0 %v2901_v35  ;;  %2307 = vmatpush1.bf16.msra.mxu1 %v2904_v36  ;;  %v2979_v36 = vld [vmem:[%s4465_s7 + $0xa0] ss:$8 sps:$4 sm:$0xff]  }
  0x97   : > { %2195 = vmatprep.subr.bf16.mxu0 %v2909_v37  ;;  %2308 = vmatprep.subr.bf16.mxu1 %v2912_v38  ;;  %v2982_v37 = vld [vmem:[%s4465_s7 + $0x1a0] ss:$8 sps:$4 sm:$0xff]  }
  0x9a   : > { %2196 = vmatpush1.bf16.msra.mxu0 %v2907_v40  ;;  %2309 = vmatpush1.bf16.msra.mxu1 %v2910_v41  ;;  %v2987_v40 = vld [vmem:[%s4465_s7 + $0x94] ss:$8 sps:$4 sm:$0xff]  }
  0x9b   : > { %2197 = vmatprep.subr.bf16.mxu0 %v2915_v42  ;;  %2310 = vmatprep.subr.bf16.mxu1 %v2918_v43  ;;  %v2990_v41 = vld [vmem:[%s4465_s7 + $0x194] ss:$8 sps:$4 sm:$0xff]  }
  0x9c   : > { %2765 = vmatmul.mubr.msk.bf16.gmra.mxu0 %vm532_vm0, %v2894_v31  ;;  %2773 = vmatmul.mubr.msk.bf16.gmra.mxu1 %vm532_vm0, %v2894_v31 }
  0x9d   : > { %1249 = vmatprep.mubr.bf16.mxu0 %v3009_v3  ;;  %1362 = vmatprep.mubr.bf16.mxu1 %v3009_v3 }
  0x9e   : > { %2198 = vmatpush1.bf16.msra.mxu0 %v2913_v44  ;;  %2311 = vmatpush1.bf16.msra.mxu1 %v2916_v45  ;;  %v2985_v44 = vld [vmem:[%s4465_s7 + $0x90] ss:$8 sps:$4 sm:$0xff]  }
  0x9f   : > { %2199 = vmatprep.subr.bf16.mxu0 %v2921_v46  ;;  %2312 = vmatprep.subr.bf16.mxu1 %v2924_v47  ;;  %v2988_v45 = vld [vmem:[%s4465_s7 + $0x190] ss:$8 sps:$4 sm:$0xff]  }
  0xa2   : > { %2200 = vmatpush1.bf16.msra.mxu0 %v2919_v49  ;;  %2313 = vmatpush1.bf16.msra.mxu1 %v2922_v50  ;;  %v2993_v50 = vld [vmem:[%s4465_s7 + $0x84] ss:$8 sps:$4 sm:$0xff]  }
  0xa3   : > { %2201 = vmatprep.subr.bf16.mxu0 %v2927_v51  ;;  %2314 = vmatprep.subr.bf16.mxu1 %v2930_v52  ;;  %v2996_v51 = vld [vmem:[%s4465_s7 + $0x184] ss:$8 sps:$4 sm:$0xff]  }
  0xa4   : > { %2766 = vmatmul.mubr.msk.bf16.gmra.mxu0 %vm532_vm0, %v2895_v32  ;;  %2774 = vmatmul.mubr.msk.bf16.gmra.mxu1 %vm532_vm0, %v2895_v32  ;;  %v2981_v32 = vld [vmem:[%s4465_s7 + $0xa4] ss:$8 sps:$4 sm:$0xff]  }
  0xa5   : > { %1259 = vmatprep.mubr.bf16.mxu0 %v3009_v3  ;;  %1372 = vmatprep.mubr.bf16.mxu1 %v3009_v3 }
  0xa6   : > { %2202 = vmatpush1.bf16.msra.mxu0 %v2925_v53  ;;  %2315 = vmatpush1.bf16.msra.mxu1 %v2928_v54  ;;  %v2991_v54 = vld [vmem:[%s4465_s7 + $0x80] ss:$8 sps:$4 sm:$0xff]  }
  0xa7   : > { %2203 = vmatprep.subr.bf16.mxu0 %v2933_v55  ;;  %2316 = vmatprep.subr.bf16.mxu1 %v2936_v56  ;;  %v2994_v55 = vld [vmem:[%s4465_s7 + $0x180] ss:$8 sps:$4 sm:$0xff]  }
  0xaa   : > { %2204 = vmatpush1.bf16.msra.mxu0 %v2931_v58  ;;  %2317 = vmatpush1.bf16.msra.mxu1 %v2934_v59 }
  0xab   : > { %2205 = vmatprep.subr.bf16.mxu0 %v2939_v60  ;;  %2318 = vmatprep.subr.bf16.mxu1 %v2942_v61 }
  0xac   : > { %2767 = vmatmul.mubr.msk.bf16.gmra.mxu0 %vm532_vm0, %v2896_v39  ;;  %2775 = vmatmul.mubr.msk.bf16.gmra.mxu1 %vm532_vm0, %v2896_v39 }
  0xad   : > { %1269 = vmatprep.mubr.bf16.mxu0 %v3009_v3  ;;  %1382 = vmatprep.mubr.bf16.mxu1 %v3009_v3 }
  0xae   : > { %2206 = vmatpush1.bf16.msra.mxu0 %v2937_v62  ;;  %2319 = vmatpush1.bf16.msra.mxu1 %v2940_v63 }
  0xaf   : > { %2207 = vmatprep.subr.bf16.mxu0 %v2945_v0  ;;  %2320 = vmatprep.subr.bf16.mxu1 %v2948_v1 }
  0xb2   : > { %2208 = vmatpush1.bf16.msra.mxu0 %v2943_v4  ;;  %2321 = vmatpush1.bf16.msra.mxu1 %v2946_v5 }
  0xb3   : > { %2209 = vmatprep.subr.bf16.mxu0 %v2951_v6  ;;  %2322 = vmatprep.subr.bf16.mxu1 %v2954_v7 }
  0xb4   : > { %2768 = vmatmul.mubr.msk.bf16.gmra.mxu0 %vm532_vm0, %v2897_v48  ;;  %2776 = vmatmul.mubr.msk.bf16.gmra.mxu1 %vm532_vm0, %v2897_v48 }
  0xb5   : > { %1279 = vmatprep.mubr.bf16.mxu0 %v3009_v3  ;;  %1392 = vmatprep.mubr.bf16.mxu1 %v3009_v3 }
  0xb6   : > { %2210 = vmatpush2.bf16.msra.mxu0 %v2949_v8  ;;  %2323 = vmatpush2.bf16.msra.mxu1 %v2952_v9 }
  0xb7   : > { %2211 = vmatprep.subr.bf16.mxu0 %v2957_v10  ;;  %2324 = vmatprep.subr.bf16.mxu1 %v2960_v11 }
  0xba   : > { %2212 = vmatpush2.bf16.msra.mxu0 %v2955_v13 }
  0xbb   : > { %2213 = vmatprep.subr.bf16.mxu0 %v2963_v14 }
  0xbc   : > { %2769 = vmatmul.mubr.msk.bf16.gmra.mxu0 %vm532_vm0, %v2898_v57  ;;  %2777 = vmatmul.mubr.msk.bf16.gmra.mxu1 %vm532_vm0, %v2898_v57 }
  0xbd   : > { %1289 = vmatprep.mubr.bf16.mxu0 %v3009_v3  ;;  %1402 = vmatprep.mubr.bf16.mxu1 %v3009_v3 }
  0xbe   : > { %2214 = vmatpush2.bf16.msra.mxu0 %v2961_v16 }
  0xbf   : > { %2215 = vmatprep.subr.bf16.mxu0 %v2969_v18 }
  0xc2   : > { %2216 = vmatpush2.bf16.msra.mxu0 %v2967_v20 }
  0xc3   : > { %2217 = vmatprep.subr.bf16.mxu0 %v2975_v22 }
  0xc4   : > { %2770 = vmatmul.mubr.msk.bf16.gmra.mxu0 %vm532_vm0, %v2899_v2  ;;  %2778 = vmatmul.mubr.msk.bf16.gmra.mxu1 %vm532_vm0, %v2899_v2 }
  0xc5   : > { %1299 = vmatprep.mubr.bf16.mxu0 %v3009_v3  ;;  %1412 = vmatprep.mubr.bf16.mxu1 %v3009_v3  ;;  %v2958_v3 = vld [vmem:[%s4465_s7 + $0x1e0] ss:$8 sps:$4 sm:$0xff]  }
  0xc6   : > { %2325 = vmatpush2.bf16.msra.mxu1 %v2958_v3  ;;  %2218 = vmatpush2.bf16.msra.mxu0 %v2973_v26 }
  0xc7   : > { %2326 = vmatprep.subr.bf16.mxu1 %v2966_v15  ;;  %2219 = vmatprep.subr.bf16.mxu0 %v2981_v32 }
  0xca   : > { %2327 = vmatpush2.bf16.msra.mxu1 %v2964_v17  ;;  %2220 = vmatpush2.bf16.msra.mxu0 %v2979_v36 }
  0xcb   : > { %2328 = vmatprep.subr.bf16.mxu1 %v2972_v19  ;;  %2221 = vmatprep.subr.bf16.mxu0 %v2987_v40 }
  0xcc   : > { %2771 = vmatmul.mubr.msk.bf16.gmra.mxu0 %vm532_vm0, %v2900_v12  ;;  %2779 = vmatmul.mubr.msk.bf16.gmra.mxu1 %vm532_vm0, %v2900_v12 }
  0xce   : > { %2329 = vmatpush2.bf16.msra.mxu1 %v2970_v21  ;;  %2222 = vmatpush2.bf16.msra.mxu0 %v2985_v44 }
  0xcf   : > { %2330 = vmatprep.subr.bf16.mxu1 %v2978_v23  ;;  %2223 = vmatprep.subr.bf16.mxu0 %v2993_v50 }
  0xd2   : > { %2331 = vmatpush2.bf16.msra.mxu1 %v2976_v27  ;;  %2224 = vmatpush2.bf16.msra.mxu0 %v2991_v54 }
  0xd3   : > { %2332 = vmatprep.subr.bf16.mxu1 %v2984_v33 }
  0xd4   : > { %v3407_v24 = vpop.f32.mrf.mxu0  ;;  %v3409_v25 = vpop.f32.mrf.mxu1 }
  0xd6   : > { %v3417_v28 = vpop.f32.mrf.mxu0  ;;  %v3419_v29 = vpop.f32.mrf.mxu1  ;;  %2333 = vmatpush2.bf16.msra.mxu1 %v2982_v37 }
  0xd7   : > { %2334 = vmatprep.subr.bf16.mxu1 %v2990_v41 }
  0xd8   : > { %v3421_v30 = vpop.f32.mrf.mxu0  ;;  %v3423_v31 = vpop.f32.mrf.mxu1 }
  0xda   : > { %v3431_v34 = vpop.f32.mrf.mxu0  ;;  %v3433_v35 = vpop.f32.mrf.mxu1  ;;  %2335 = vmatpush2.bf16.msra.mxu1 %v2988_v45 }
  0xdb   : > { %4481 = vst [vmem:[#allocation3_spill] sm:$0xff] %v3431_v34  ;;  %4482 = vst [vmem:[#allocation4_spill] sm:$0xff] %v3433_v35  ;;  %2336 = vmatprep.subr.bf16.mxu1 %v2996_v51 }
  0xdc   : > { %v3441_v38 = vpop.f32.mrf.mxu0  ;;  %v3443_v39 = vpop.f32.mrf.mxu1 }
  0xde   : > { %v3451_v42 = vpop.f32.mrf.mxu0  ;;  %v3453_v43 = vpop.f32.mrf.mxu1  ;;  %2337 = vmatpush2.bf16.msra.mxu1 %v2994_v55 }
  0xe0   : > { %v3461_v46 = vpop.f32.mrf.mxu0  ;;  %v3463_v47 = vpop.f32.mrf.mxu1 }
  0xe2   : > { %v3465_v48 = vpop.f32.mrf.mxu0  ;;  %v3467_v49 = vpop.f32.mrf.mxu1 }
  0xe3   : > { %4483 = vst [vmem:[#allocation5_spill] sm:$0xff] %v3465_v48  ;;  %4484 = vst [vmem:[#allocation6_spill] sm:$0xff] %v3467_v49 }
  0xe4   : > { %v3475_v52 = vpop.f32.mrf.mxu0  ;;  %v3477_v53 = vpop.f32.mrf.mxu1 }
  0xe6   : > { %v3485_v56 = vpop.f32.mrf.mxu0  ;;  %v3487_v57 = vpop.f32.mrf.mxu1 }
  0xe8   : > { %v3489_v58 = vpop.f32.mrf.mxu0  ;;  %v3491_v59 = vpop.f32.mrf.mxu1 }
  0xea   : > { %v3493_v60 = vpop.f32.mrf.mxu0  ;;  %v3495_v61 = vpop.f32.mrf.mxu1 }
  0xeb   : > { %4485 = vst [vmem:[#allocation7_spill] sm:$0xff] %v3493_v60  ;;  %4486 = vst [vmem:[#allocation8_spill] sm:$0xff] %v3495_v61 }
  0xec   : > { %v3497_v62 = vpop.f32.mrf.mxu0  ;;  %v3499_v63 = vpop.f32.mrf.mxu1 }
  0xee   : > { %v3501_v0 = vpop.f32.mrf.mxu0  ;;  %v3503_v1 = vpop.f32.mrf.mxu1 }
  0xf0   : > { %v3505_v2 = vpop.f32.mrf.mxu0  ;;  %v3507_v4 = vpop.f32.mrf.mxu1 }
  0xf2   : > { %v3509_v5 = vpop.f32.mrf.mxu0  ;;  %v3511_v6 = vpop.f32.mrf.mxu1 }
  0xf3   : > { %4487 = vst [vmem:[#allocation9_spill] sm:$0xff] %v3509_v5  ;;  %4488 = vst [vmem:[#allocation10_spill] sm:$0xff] %v3511_v6 }
  0xf4   : > { %v3513_v7 = vpop.f32.mrf.mxu0  ;;  %v3515_v8 = vpop.f32.mrf.mxu1 }
  0xf6   : > { %v3517_v9 = vpop.f32.mrf.mxu0  ;;  %v3519_v10 = vpop.f32.mrf.mxu1 }
  0xf8   : > { %v3521_v11 = vpop.f32.mrf.mxu0  ;;  %v3523_v12 = vpop.f32.mrf.mxu1 }
  0xfa   : > { %v3525_v13 = vpop.f32.mrf.mxu0  ;;  %v3527_v3 = vpop.f32.mrf.mxu1 }
  0xfb   : > { %4489 = vst [vmem:[#allocation11_spill] sm:$0xff] %v3525_v13 }
  0xfc   : > { %v3529_v14 = vpop.f32.mrf.mxu0  ;;  %v3531_v15 = vpop.f32.mrf.mxu1 }
  0xfe   : > { %v3533_v16 = vpop.f32.mrf.mxu0  ;;  %v3535_v17 = vpop.f32.mrf.mxu1 }
 0x100   : > { %v3537_v18 = vpop.f32.mrf.mxu0  ;;  %v3539_v19 = vpop.f32.mrf.mxu1 }
 0x102   : > { %v3541_v20 = vpop.f32.mrf.mxu0  ;;  %v3543_v21 = vpop.f32.mrf.mxu1 }
 0x104   : > { %v3545_v22 = vpop.f32.mrf.mxu0  ;;  %v3547_v23 = vpop.f32.mrf.mxu1 }
 0x106   : > { %v3549_v26 = vpop.f32.mrf.mxu0  ;;  %v3551_v27 = vpop.f32.mrf.mxu1 }
 0x108   : > { %v3553_v32 = vpop.f32.mrf.mxu0  ;;  %v3555_v33 = vpop.f32.mrf.mxu1 }
 0x10a   : > { %v3557_v36 = vpop.f32.mrf.mxu0  ;;  %v3559_v37 = vpop.f32.mrf.mxu1 }
 0x10c   : > { %v3561_v40 = vpop.f32.mrf.mxu0  ;;  %v3563_v41 = vpop.f32.mrf.mxu1 }
 0x10e   : > { %v3565_v44 = vpop.f32.mrf.mxu0  ;;  %v3567_v45 = vpop.f32.mrf.mxu1 }
 0x110   : > { %v3569_v50 = vpop.f32.mrf.mxu0  ;;  %v3571_v51 = vpop.f32.mrf.mxu1 }
 0x111   : > { %4490 = vst [vmem:[#allocation12_spill] sm:$0xff] %v3571_v51 }
 0x112   : > { %v3573_v54 = vpop.f32.mrf.mxu0  ;;  %v3575_v55 = vpop.f32.mrf.mxu1 }
 0x113   : > { %4491 = vst [vmem:[#allocation13_spill] sm:$0xff] %v3573_v54  ;;  %4492 = vst [vmem:[#allocation14_spill] sm:$0xff] %v3575_v55 }
 0x114   : > { %v901_v13 = vpop.f32.mrf.mxu0  ;;  %v1014_v6 = vpop.f32.mrf.mxu1 }
 0x115   : > { %v3578_v5 = vadd.f32 %v901_v13, %v3407_v24  ;;  %v3581_v61 = vadd.f32 %v1014_v6, %v3409_v25 }
 0x116   : > { %v903_v60 = vpop.f32.mrf.mxu0  ;;  %v1016_v49 = vpop.f32.mrf.mxu1 }
 0x117   : > { %v3584_v48 = vadd.f32 %v903_v60, %v3417_v28  ;;  %v3587_v35 = vadd.f32 %v1016_v49, %v3419_v29 }
 0x118   : > { %v905_v34 = vpop.f32.mrf.mxu0  ;;  %v1018_v54 = vpop.f32.mrf.mxu1 }
 0x119   : > { %4493 = vst [vmem:[#allocation15_spill] sm:$0xff] %v3584_v48  ;;  %4494 = vst [vmem:[#allocation16_spill] sm:$0xff] %v3587_v35  ;;  %v3590_v55 = vadd.f32 %v905_v34, %v3421_v30  ;;  %v3593_v51 = vadd.f32 %v1018_v54, %v3423_v31 }
 0x11a   : > { %v3595_v24 = vpop.f32.mrf.mxu0  ;;  %v3597_v25 = vpop.f32.mrf.mxu1 }
 0x11c   : > { %v911_v6 = vpop.f32.mrf.mxu0  ;;  %v1024_v13 = vpop.f32.mrf.mxu1 }
 0x11d   : > { %v3600_v28 = vadd.f32 %v911_v6, %v3441_v38  ;;  %v3603_v29 = vadd.f32 %v1024_v13, %v3443_v39 }
 0x11e   : > { %v913_v49 = vpop.f32.mrf.mxu0  ;;  %v1026_v60 = vpop.f32.mrf.mxu1 }
 0x11f   : > { %v3606_v30 = vadd.f32 %v913_v49, %v3451_v42  ;;  %v3609_v31 = vadd.f32 %v1026_v60, %v3453_v43 }
 0x120   : > { %v915_v34 = vpop.f32.mrf.mxu0  ;;  %v1028_v54 = vpop.f32.mrf.mxu1 }
 0x121   : > { %v3612_v35 = vadd.f32 %v915_v34, %v3461_v46  ;;  %v3615_v48 = vadd.f32 %v1028_v54, %v3463_v47 }
 0x122   : > { %v3617_v38 = vpop.f32.mrf.mxu0  ;;  %v3619_v39 = vpop.f32.mrf.mxu1 }
 0x123   : > { %4495 = vst [vmem:[#allocation17_spill] sm:$0xff] %v3612_v35  ;;  %4496 = vst [vmem:[#allocation18_spill] sm:$0xff] %v3615_v48 }
 0x124   : > { %v921_v6 = vpop.f32.mrf.mxu0  ;;  %v1034_v13 = vpop.f32.mrf.mxu1 }
 0x125   : > { %v3622_v42 = vadd.f32 %v921_v6, %v3475_v52  ;;  %v3625_v43 = vadd.f32 %v1034_v13, %v3477_v53 }
 0x126   : > { %v923_v49 = vpop.f32.mrf.mxu0  ;;  %v1036_v60 = vpop.f32.mrf.mxu1 }
 0x127   : > { %v3628_v46 = vadd.f32 %v923_v49, %v3485_v56  ;;  %v3631_v47 = vadd.f32 %v1036_v60, %v3487_v57 }
 0x128   : > { %v925_v34 = vpop.f32.mrf.mxu0  ;;  %v1038_v54 = vpop.f32.mrf.mxu1 }
 0x129   : > { %v3634_v48 = vadd.f32 %v925_v34, %v3489_v58  ;;  %v3637_v35 = vadd.f32 %v1038_v54, %v3491_v59 }
 0x12a   : > { %v3639_v52 = vpop.f32.mrf.mxu0  ;;  %v3641_v53 = vpop.f32.mrf.mxu1 }
 0x12b   : > { %4497 = vst [vmem:[#allocation19_spill] sm:$0xff] %v3634_v48  ;;  %4498 = vst [vmem:[#allocation20_spill] sm:$0xff] %v3637_v35 }
 0x12c   : > { %v931_v6 = vpop.f32.mrf.mxu0  ;;  %v1044_v13 = vpop.f32.mrf.mxu1 }
 0x12d   : > { %v3644_v56 = vadd.f32 %v931_v6, %v3497_v62  ;;  %v3647_v57 = vadd.f32 %v1044_v13, %v3499_v63 }
 0x12e   : > { %v933_v49 = vpop.f32.mrf.mxu0  ;;  %v1046_v60 = vpop.f32.mrf.mxu1 }
 0x12f   : > { %v3650_v58 = vadd.f32 %v933_v49, %v3501_v0  ;;  %v3653_v59 = vadd.f32 %v1046_v60, %v3503_v1 }
 0x130   : > { %v935_v34 = vpop.f32.mrf.mxu0  ;;  %v1048_v54 = vpop.f32.mrf.mxu1 }
 0x131   : > { %v3656_v35 = vadd.f32 %v935_v34, %v3505_v2  ;;  %v3659_v48 = vadd.f32 %v1048_v54, %v3507_v4 }
 0x132   : > { %v3661_v62 = vpop.f32.mrf.mxu0  ;;  %v3663_v63 = vpop.f32.mrf.mxu1 }
 0x133   : > { %4499 = vst [vmem:[#allocation21_spill] sm:$0xff] %v3656_v35  ;;  %4500 = vst [vmem:[#allocation22_spill] sm:$0xff] %v3659_v48 }
 0x134   : > { %v941_v6 = vpop.f32.mrf.mxu0  ;;  %v1054_v13 = vpop.f32.mrf.mxu1 }
 0x135   : > { %v3666_v0 = vadd.f32 %v941_v6, %v3513_v7  ;;  %v3669_v1 = vadd.f32 %v1054_v13, %v3515_v8 }
 0x136   : > { %v943_v49 = vpop.f32.mrf.mxu0  ;;  %v1056_v60 = vpop.f32.mrf.mxu1 }
 0x137   : > { %v3672_v2 = vadd.f32 %v943_v49, %v3517_v9  ;;  %v3675_v4 = vadd.f32 %v1056_v60, %v3519_v10 }
 0x138   : > { %v945_v34 = vpop.f32.mrf.mxu0  ;;  %v1058_v54 = vpop.f32.mrf.mxu1 }
 0x139   : > { %v3678_v48 = vadd.f32 %v945_v34, %v3521_v11  ;;  %v3681_v35 = vadd.f32 %v1058_v54, %v3523_v12 }
 0x13a   : > { %v3683_v7 = vpop.f32.mrf.mxu0  ;;  %v1060_v8 = vpop.f32.mrf.mxu1 }
 0x13b   : > { %4501 = vst [vmem:[#allocation23_spill] sm:$0xff] %v3681_v35  ;;  %v3686_v6 = vadd.f32 %v1060_v8, %v3527_v3 }
 0x13c   : > { %v951_v13 = vpop.f32.mrf.mxu0  ;;  %v1064_v9 = vpop.f32.mrf.mxu1 }
 0x13d   : > { %v3689_v49 = vadd.f32 %v951_v13, %v3529_v14  ;;  %v3692_v10 = vadd.f32 %v1064_v9, %v3531_v15 }
 0x13e   : > { %v953_v60 = vpop.f32.mrf.mxu0  ;;  %v1066_v11 = vpop.f32.mrf.mxu1 }
 0x13f   : > { %4502 = vst [vmem:[#allocation24_spill] sm:$0xff] %v3692_v10  ;;  %v3695_v34 = vadd.f32 %v953_v60, %v3533_v16  ;;  %v3698_v12 = vadd.f32 %v1066_v11, %v3535_v17 }
 0x140   : > { %v955_v54 = vpop.f32.mrf.mxu0  ;;  %v1068_v35 = vpop.f32.mrf.mxu1 }
 0x141   : > { %4503 = vst [vmem:[#allocation25_spill] sm:$0xff] %v3695_v34  ;;  %4504 = vst [vmem:[#allocation26_spill] sm:$0xff] %v3698_v12  ;;  %v3701_v3 = vadd.f32 %v955_v54, %v3537_v18  ;;  %v3704_v8 = vadd.f32 %v1068_v35, %v3539_v19 }
 0x142   : > { %v957_v14 = vpop.f32.mrf.mxu0  ;;  %v1070_v13 = vpop.f32.mrf.mxu1 }
 0x143   : > { %4505 = vst [vmem:[#allocation27_spill] sm:$0xff] %v3701_v3  ;;  %4506 = vst [vmem:[#allocation28_spill] sm:$0xff] %v3704_v8  ;;  %v3707_v15 = vadd.f32 %v957_v14, %v3541_v20  ;;  %v3710_v9 = vadd.f32 %v1070_v13, %v3543_v21  ;;  %v1489_v21 = vlaneseq  ;;  %v4541_v8 = vld [vmem:[#allocation11_spill] sm:$0xff] }
 0x144   : > { %v961_v16 = vpop.f32.mrf.mxu0  ;;  %v1074_v60 = vpop.f32.mrf.mxu1  ;;  %v3846_v3 = vadd.f32 %v3683_v7, %v4541_v8 }
 0x145   : > { %4507 = vst [vmem:[#allocation29_spill] sm:$0xff] %v3707_v15  ;;  %4508 = vst [vmem:[#allocation30_spill] sm:$0xff] %v3710_v9  ;;  %v3713_v17 = vadd.f32 %v961_v16, %v3545_v22  ;;  %v3716_v11 = vadd.f32 %v1074_v60, %v3547_v23 }
 0x146   : > { %v963_v18 = vpop.f32.mrf.mxu0  ;;  %v1076_v54 = vpop.f32.mrf.mxu1 }
 0x147   : > { %4509 = vst [vmem:[#allocation31_spill] sm:$0xff] %v3713_v17  ;;  %4510 = vst [vmem:[#allocation32_spill] sm:$0xff] %v3716_v11  ;;  %v3719_v35 = vadd.f32 %v963_v18, %v3549_v26  ;;  %v3722_v19 = vadd.f32 %v1076_v54, %v3551_v27  ;;  %v3736_v54 = vshrl.u32 %v1489_v21, 7 }
 0x148   : > { %v965_v20 = vpop.f32.mrf.mxu0  ;;  %v1078_v14 = vpop.f32.mrf.mxu1 }
 0x149   : > { %4511 = vst [vmem:[#allocation33_spill] sm:$0xff] %v3719_v35  ;;  %4512 = vst [vmem:[#allocation34_spill] sm:$0xff] %v3722_v19  ;;  %v3725_v13 = vadd.f32 %v965_v20, %v3553_v32  ;;  %v3728_v22 = vadd.f32 %v1078_v14, %v3555_v33  ;;  %v1499_v21 = vsub.s32 2, %v3736_v54  ;;  %v4533_v35 = vld [vmem:[#allocation16_spill] sm:$0xff] }
 0x14a   : > { %v967_v16 = vpop.f32.mrf.mxu0  ;;  %v1080_v23 = vpop.f32.mrf.mxu1  ;;  %4517 = vst [vmem:[#allocation39_spill] sm:$0xff] %v3736_v54 }
 0x14b   : > { %4513 = vst [vmem:[#allocation35_spill] sm:$0xff] %v3725_v13  ;;  %4514 = vst [vmem:[#allocation36_spill] sm:$0xff] %v3728_v22  ;;  %v3731_v60 = vadd.f32 %v967_v16, %v3557_v36  ;;  %v3734_v26 = vadd.f32 %v1080_v23, %v3559_v37  ;;  %v3751_v23 = vsub.s32 0, %v3736_v54  ;;  %v4532_v22 = vld [vmem:[#allocation15_spill] sm:$0xff] }
 0x14c   : > { %v971_v18 = vpop.f32.mrf.mxu0  ;;  %v1084_v27 = vpop.f32.mrf.mxu1 }
 0x14d   : > { %4515 = vst [vmem:[#allocation37_spill] sm:$0xff] %v3731_v60  ;;  %4516 = vst [vmem:[#allocation38_spill] sm:$0xff] %v3734_v26  ;;  %v3739_v19 = vadd.f32 %v971_v18, %v3561_v40  ;;  %v3742_v32 = vadd.f32 %v1084_v27, %v3563_v41  ;;  %v4524_v41 = vld [vmem:[#allocation12_spill] sm:$0xff] }
 0x14e   : > { %v973_v33 = vpop.f32.mrf.mxu0  ;;  %v1086_v20 = vpop.f32.mrf.mxu1  ;;  %4522 = vst [vmem:[#allocation44_spill] sm:$0xff] %v3751_v23 }
 0x14f   : > { %4518 = vst [vmem:[#allocation40_spill] sm:$0xff] %v3739_v19  ;;  %4519 = vst [vmem:[#allocation41_spill] sm:$0xff] %v3742_v32  ;;  %v3745_v14 = vadd.f32 %v973_v33, %v3565_v44  ;;  %v3748_v36 = vadd.f32 %v1086_v20, %v3567_v45  ;;  %v1487_v44 = vld [vmem:[%s4464_s6] sm:$0xf]  ;;  %v4526_v33 = vld [vmem:[#allocation13_spill] sm:$0xff] }
 0x150   : > { %v975_v37 = vpop.f32.mrf.mxu0  ;;  %v1088_v16 = vpop.f32.mrf.mxu1  ;;  %v3770_v19 = vrot.slane %v1487_v44, %v3751_v23 }
 0x151   : > { %4520 = vst [vmem:[#allocation42_spill] sm:$0xff] %v3745_v14  ;;  %4521 = vst [vmem:[#allocation43_spill] sm:$0xff] %v3748_v36  ;;  %v3755_v40 = vadd.f32 %v975_v37, %v3569_v50  ;;  %v3758_v18 = vadd.f32 %v1088_v16, %v4524_v41  ;;  %v4528_v36 = vld [vmem:[#allocation14_spill] sm:$0xff]  ;;  %v3772_v37 = vrot.slane %v1487_v44, %v1499_v21 }
 0x152   : > { %v977_v27 = vpop.f32.mrf.mxu0  ;;  %v1090_v45 = vpop.f32.mrf.mxu1 }
 0x153   : > { %4523 = vst [vmem:[#allocation45_spill] sm:$0xff] %v3755_v40  ;;  %4525 = vst [vmem:[#allocation12_spill] sm:$0xff] %v3758_v18  ;;  %v3764_v20 = vadd.f32 %v977_v27, %v4526_v33  ;;  %v3767_v14 = vadd.f32 %v1090_v45, %v4528_v36  ;;  %v4474_v40 = vsub.s32 1, %v3736_v54  ;;  %v1503_v27 = vsub.s32 3, %v3736_v54 }
 0x154   : > { %v1231_v32 = vpop.f32.mrf.mxu0  ;;  %v1344_v50 = vpop.f32.mrf.mxu1 }
 0x155   : > { %4527 = vst [vmem:[#allocation13_spill] sm:$0xff] %v3764_v20  ;;  %4529 = vst [vmem:[#allocation14_spill] sm:$0xff] %v3767_v14  ;;  %v1423_v16 = vadd.f32 %v1231_v32, %v3578_v5  ;;  %v1425_v41 = vadd.f32 %v1344_v50, %v3581_v61  ;;  %v3782_v21 = vrot.slane %v1487_v44, %v4474_v40  ;;  %v4530_v20 = vld [vmem:[#allocation3_spill] sm:$0xff] }
 0x156   : > { %v1233_v18 = vpop.f32.mrf.mxu0  ;;  %v1346_v26 = vpop.f32.mrf.mxu1  ;;  %v3784_v14 = vrot.slane %v1487_v44, %v1503_v27  ;;  %v908_v60 = vadd.f32 %v3595_v24, %v4530_v20 }
 0x157   : > { %v1509_v36 = vadd.f32 %v3770_v19, %v1423_v16  ;;  %v1511_v45 = vadd.f32 %v3772_v37, %v1425_v41  ;;  %v4531_v16 = vld [vmem:[#allocation4_spill] sm:$0xff]  ;;  %v1424_v13 = vadd.f32 %v1233_v18, %v4532_v22  ;;  %v1426_v54 = vadd.f32 %v1346_v26, %v4533_v35 }
 0x158   : > { %v1235_v33 = vpop.f32.mrf.mxu0  ;;  %v1348_v23 = vpop.f32.mrf.mxu1  ;;  %v1021_v41 = vadd.f32 %v3597_v25, %v4531_v16 }
 0x159   : > { %v1427_v61 = vadd.f32 %v1235_v33, %v3590_v55  ;;  %v1429_v5 = vadd.f32 %v1348_v23, %v3593_v51  ;;  %vm1573_vm1 = vcmp.gt.f32.partialorder %v1509_v36, 0.0  ;;  %v1637_v40 = vmul.f32 0.2, %v1509_v36 }
 0x15a   : > { %v1237_v32 = vpop.f32.mrf.mxu0  ;;  %v1350_v50 = vpop.f32.mrf.mxu1  ;;  %vm1575_vm2 = vcmp.gt.f32.partialorder %v1511_v45, 0.0  ;;  %v1639_v44 = vmul.f32 0.2, %v1511_v45  ;;  %v1510_v18 = vadd.f32 %v3782_v21, %v1424_v13  ;;  %v1512_v16 = vadd.f32 %v3784_v14, %v1426_v54 }
 0x15b   : > { %v1513_v51 = vadd.f32 %v3770_v19, %v1427_v61  ;;  %v1515_v23 = vadd.f32 %v3772_v37, %v1429_v5  ;;  %v1428_v33 = vadd.f32 %v1237_v32, %v908_v60  ;;  %v1430_v11 = vadd.f32 %v1350_v50, %v1021_v41  ;;  %v4534_v41 = vld [vmem:[#allocation5_spill] sm:$0xff] }
 0x15c   : > { %v1241_v27 = vpop.f32.mrf.mxu0  ;;  %v1354_v55 = vpop.f32.mrf.mxu1  ;;  %v3797_v35 = vsel %vm1573_vm1, %v1509_v36, %v1637_v40  ;;  %v3799_v26 = vsel %vm1575_vm2, %v1511_v45, %v1639_v44  ;;  %v918_v40 = vadd.f32 %v3617_v38, %v4534_v41  ;;  %v4538_v41 = vld [vmem:[#allocation9_spill] sm:$0xff]  ;;  %vm1574_vm5 = vcmp.gt.f32.partialorder %v1510_v18, 0.0 }
 0x15d   : > { %vm1577_vm3 = vcmp.gt.f32.partialorder %v1513_v51, 0.0  ;;  %v1641_v25 = vmul.f32 0.2, %v1513_v51  ;;  %vm1579_vm4 = vcmp.gt.f32.partialorder %v1515_v23, 0.0  ;;  %v1643_v22 = vmul.f32 0.2, %v1515_v23 }
 0x15e   : > { %v1243_v24 = vpop.f32.mrf.mxu0  ;;  %v1356_v20 = vpop.f32.mrf.mxu1  ;;  %v1514_v32 = vadd.f32 %v3782_v21, %v1428_v33  ;;  %v1516_v50 = vadd.f32 %v3784_v14, %v1430_v11  ;;  %v1431_v54 = vadd.f32 %v1241_v27, %v3600_v28  ;;  %v4537_v11 = vld [vmem:[#allocation8_spill] sm:$0xff]  ;;  %v3829_v13 = vadd.f32 %v3661_v62, %v4538_v41 }
 0x15f   : > { %v3803_v5 = vsel %vm1577_vm3, %v1513_v51, %v1641_v25  ;;  %v3805_v60 = vsel %vm1579_vm4, %v1515_v23, %v1643_v22  ;;  %v4535_v51 = vld [vmem:[#allocation6_spill] sm:$0xff]  ;;  %v4536_v25 = vld [vmem:[#allocation7_spill] sm:$0xff]  ;;  %v3824_v38 = vadd.f32 %v3641_v53, %v4537_v11  ;;  %v1433_v22 = vadd.f32 %v1354_v55, %v3603_v29 }
 0x160   : > { %v1245_v61 = vpop.f32.mrf.mxu0  ;;  %v1358_v17 = vpop.f32.mrf.mxu1  ;;  %v1031_v23 = vadd.f32 %v3619_v39, %v4535_v51  ;;  %v3820_v33 = vadd.f32 %v3639_v52, %v4536_v25  ;;  %v1638_v28 = vmul.f32 0.2, %v1510_v18  ;;  %v1640_v27 = vmul.f32 0.2, %v1512_v16  ;;  %v4539_v25 = vld [vmem:[#allocation10_spill] sm:$0xff] }
 0x161   : > { %v1432_v36 = vadd.f32 %v1243_v24, %v3606_v30  ;;  %vm1576_vm6 = vcmp.gt.f32.partialorder %v1512_v16, 0.0  ;;  %v1642_v52 = vmul.f32 0.2, %v1514_v32  ;;  %v1644_v51 = vmul.f32 0.2, %v1516_v50  ;;  %v4540_v24 = vld [vmem:[#allocation17_spill] sm:$0xff] }
 0x162   : > { %v1247_v45 = vpop.f32.mrf.mxu0  ;;  %v1360_v44 = vpop.f32.mrf.mxu1  ;;  %vm1578_vm7 = vcmp.gt.f32.partialorder %v1514_v32, 0.0  ;;  %vm1580_vm8 = vcmp.gt.f32.partialorder %v1516_v50, 0.0  ;;  %v3833_v53 = vadd.f32 %v3770_v19, %v1431_v54  ;;  %v1434_v29 = vadd.f32 %v1356_v20, %v3609_v31 }
 0x163   : > { %v3838_v11 = vadd.f32 %v3663_v63, %v4539_v25  ;;  %v3841_v30 = vadd.f32 %v3772_v37, %v1433_v22  ;;  %v1435_v41 = vadd.f32 %v1245_v61, %v4540_v24  ;;  %v1436_v15 = vadd.f32 %v1247_v45, %v918_v40  ;;  %v4542_v25 = vld [vmem:[#allocation18_spill] sm:$0xff]  ;;  %v4545_v24 = vld [vmem:[#allocation19_spill] sm:$0xff] }
 0x164   : > { %v1251_v9 = vpop.f32.mrf.mxu0  ;;  %v1364_v39 = vpop.f32.mrf.mxu1  ;;  %v3849_v54 = vadd.f32 %v3782_v21, %v1432_v36  ;;  %v1702_v31 = vsel %vm1574_vm5, %v1510_v18, %v1638_v28  ;;  %v1704_v20 = vsel %vm1576_vm6, %v1512_v16, %v1640_v27  ;;  %v1437_v34 = vadd.f32 %v1358_v17, %v4542_v25 }
 0x165   : > { %v1438_v22 = vadd.f32 %v1360_v44, %v1031_v23  ;;  %v1706_v10 = vsel %vm1578_vm7, %v1514_v32, %v1642_v52  ;;  %v1708_v61 = vsel %vm1580_vm8, %v1516_v50, %v1644_v51  ;;  %vm1581_vm9 = vcmp.gt.f32.partialorder %v3833_v53, 0.0 }
 0x166   : > { %v1253_v55 = vpop.f32.mrf.mxu0  ;;  %v1366_v62 = vpop.f32.mrf.mxu1  ;;  %v1520_v7 = vadd.f32 %v3784_v14, %v1434_v29  ;;  %v1439_v8 = vadd.f32 %v1251_v9, %v3622_v42  ;;  %v1441_v40 = vadd.f32 %v1364_v39, %v3625_v43  ;;  %v1645_v16 = vmul.f32 0.2, %v3833_v53 }
 0x167   : > { %vm1583_vm10 = vcmp.gt.f32.partialorder %v3841_v30, 0.0  ;;  %v1521_v17 = vadd.f32 %v3770_v19, %v1435_v41  ;;  %v1522_v32 = vadd.f32 %v3782_v21, %v1436_v15  ;;  %v1647_v50 = vmul.f32 0.2, %v3841_v30 }
 0x168   : > { %v1255_v12 = vpop.f32.mrf.mxu0  ;;  %v1368_v63 = vpop.f32.mrf.mxu1  ;;  %vm1582_vm11 = vcmp.gt.f32.partialorder %v3849_v54, 0.0  ;;  %v1766_v45 = vpack.c.bf16 %v1706_v10, %v1702_v31  ;;  %v1768_v44 = vpack.c.bf16 %v1708_v61, %v1704_v20  ;;  %v1646_v43 = vmul.f32 0.2, %v3849_v54  ;;  %v4546_v20 = vld [vmem:[#allocation20_spill] sm:$0xff] }
 0x169   : > { %v1523_v9 = vadd.f32 %v3772_v37, %v1437_v34  ;;  %v1524_v28 = vadd.f32 %v3784_v14, %v1438_v22  ;;  %v1440_v27 = vadd.f32 %v1253_v55, %v3628_v46  ;;  %vm1584_vm12 = vcmp.gt.f32.partialorder %v1520_v7, 0.0 }
 0x16a   : > { %v1257_v18 = vpop.f32.mrf.mxu0  ;;  %v1370_v36 = vpop.f32.mrf.mxu1  ;;  %v1648_v39 = vmul.f32 0.2, %v1520_v7  ;;  %v3871_v15 = vadd.f32 %v3770_v19, %v1439_v8  ;;  %v3874_v52 = vadd.f32 %v3772_v37, %v1441_v40  ;;  %2225 = vmatprep.mubr.bf16.mxu0 %v1766_v45  ;;  %2338 = vmatprep.mubr.bf16.mxu1 %v1768_v44  ;;  %vm1585_vm13 = vcmp.gt.f32.partialorder %v1521_v17, 0.0 }
 0x16b   : > { %v1650_v29 = vmul.f32 0.2, %v1522_v32  ;;  %v4543_v34 = vpack.c.bf16 %v3803_v5, %v3797_v35  ;;  %v4544_v46 = vpack.c.bf16 %v3805_v60, %v3799_v26  ;;  %v1442_v55 = vadd.f32 %v1366_v62, %v3631_v47 }
 0x16c   : > { %v1261_v23 = vpop.f32.mrf.mxu0  ;;  %v1374_v42 = vpop.f32.mrf.mxu1  ;;  %v1443_v41 = vadd.f32 %v1255_v12, %v4545_v24  ;;  %v1649_v31 = vmul.f32 0.2, %v1521_v17  ;;  %vm1586_vm14 = vcmp.gt.f32.partialorder %v1522_v32, 0.0  ;;  %v1445_v25 = vadd.f32 %v1368_v63, %v4546_v20 }
 0x16d   : > { %2226 = vmatmul.mubr.bf16.vlgmr.msra.gmra.mxu0 %v4543_v34  ;;  %2339 = vmatmul.mubr.bf16.vlgmr.msra.gmra.mxu1 %v4544_v46  ;;  %v1444_v22 = vadd.f32 %v1257_v18, %v3820_v33  ;;  %vm1587_vm15 = vcmp.gt.f32.partialorder %v1523_v9, 0.0  ;;  %v1651_v40 = vmul.f32 0.2, %v1523_v9  ;;  %v1652_v35 = vmul.f32 0.2, %v1524_v28 }
 0x16e   : > { %v1263_v10 = vpop.f32.mrf.mxu0  ;;  %v1376_v51 = vpop.f32.mrf.mxu1  ;;  %v3887_v5 = vadd.f32 %v3782_v21, %v1440_v27  ;;  %vm1588_vm0 = vcmp.gt.f32.partialorder %v1524_v28, 0.0  ;;  %v3890_v26 = vmul.f32 0.2, %v3871_v15  ;;  %v3893_v47 = vmul.f32 0.2, %v3874_v52 }
 0x16f   : > { %v1446_v12 = vadd.f32 %v1370_v36, %v3824_v38  ;;  %v3897_v33 = vadd.f32 %v3784_v14, %v1442_v55  ;;  %v3900_v63 = vadd.f32 %v3770_v19, %v1443_v41  ;;  %v1447_v18 = vadd.f32 %v1261_v23, %v3644_v56 }
 0x170   : > { %v1265_v61 = vpop.f32.mrf.mxu0  ;;  %v1378_v8 = vpop.f32.mrf.mxu1  ;;  %v1714_v45 = vsel %vm1586_vm14, %v1522_v32, %v1650_v29  ;;  %v3905_v44 = vadd.f32 %v3772_v37, %v1445_v25  ;;  %v3908_v27 = vadd.f32 %v3782_v21, %v1444_v22  ;;  %v1449_v38 = vadd.f32 %v1374_v42, %v3647_v57 }
 0x171   : > { %v1710_v36 = vsel %vm1582_vm11, %v3849_v54, %v1646_v43  ;;  %vm1590_vm1 = vcmp.gt.f32.partialorder %v3887_v5, 0.0  ;;  %v1712_v56 = vsel %vm1584_vm12, %v1520_v7, %v1648_v39  ;;  %v1716_v32 = vsel %vm1588_vm0, %v1524_v28, %v1652_v35 }
 0x172   : > { %v1267_v60 = vpop.f32.mrf.mxu0  ;;  %v1380_v62 = vpop.f32.mrf.mxu1  ;;  %v1770_v55 = vpack.c.bf16 %v1714_v45, %v1710_v36  ;;  %v1709_v23 = vsel %vm1581_vm9, %v3833_v53, %v1645_v16  ;;  %vm1589_vm2 = vcmp.gt.f32.partialorder %v3871_v15, 0.0  ;;  %v1772_v57 = vpack.c.bf16 %v1716_v32, %v1712_v56 }
 0x173   : > { %v1713_v42 = vsel %vm1585_vm13, %v1521_v17, %v1649_v31  ;;  %v1711_v54 = vsel %vm1583_vm10, %v3841_v30, %v1647_v50  ;;  %v1715_v43 = vsel %vm1587_vm15, %v1523_v9, %v1651_v40  ;;  %vm1591_vm3 = vcmp.gt.f32.partialorder %v3874_v52, 0.0  ;;  %v4547_v9 = vld [vmem:[#allocation21_spill] sm:$0xff] }
 0x174   : > { %v1271_v34 = vpop.f32.mrf.mxu0  ;;  %v1384_v46 = vpop.f32.mrf.mxu1  ;;  %v1654_v28 = vmul.f32 0.2, %v3887_v5  ;;  %vm1592_vm4 = vcmp.gt.f32.partialorder %v3897_v33, 0.0  ;;  %2235 = vmatprep.mubr.bf16.mxu0 %v1770_v55  ;;  %v1769_v53 = vpack.c.bf16 %v1713_v42, %v1709_v23  ;;  %v1771_v16 = vpack.c.bf16 %v1715_v43, %v1711_v54  ;;  %2348 = vmatprep.mubr.bf16.mxu1 %v1772_v57 }
 0x175   : > { %v1532_v17 = vadd.f32 %v3784_v14, %v1446_v12  ;;  %v1448_v30 = vadd.f32 %v1263_v10, %v3650_v58  ;;  %v1450_v50 = vadd.f32 %v1376_v51, %v3653_v59  ;;  %v1451_v39 = vadd.f32 %v1265_v61, %v4547_v9  ;;  %v4548_v10 = vld [vmem:[#allocation22_spill] sm:$0xff] }
 0x176   : > { %v3926_v29 = vpop.f32.mrf.mxu0  ;;  %v3928_v7 = vpop.f32.mrf.mxu1  ;;  %v1656_v31 = vmul.f32 0.2, %v3897_v33  ;;  %vm1593_vm5 = vcmp.gt.f32.partialorder %v3900_v63, 0.0  ;;  %v1657_v20 = vmul.f32 0.2, %v3900_v63  ;;  %2236 = vmatmul.mubr.bf16.gmra.mxu0 %v1769_v53  ;;  %2349 = vmatmul.mubr.bf16.gmra.mxu1 %v1771_v16  ;;  %v1455_v25 = vadd.f32 %v1271_v34, %v3666_v0 }
 0x177   : > { %v3946_v58 = vadd.f32 %v3770_v19, %v1447_v18  ;;  %v3949_v59 = vadd.f32 %v3772_v37, %v1449_v38  ;;  %v1453_v51 = vadd.f32 %v1378_v8, %v4548_v10  ;;  %v1452_v22 = vadd.f32 %v1267_v60, %v3829_v13 }
 0x178   : > { %v3937_v24 = vpop.f32.mrf.mxu0  ;;  %v3939_v41 = vpop.f32.mrf.mxu1  ;;  %v3954_v35 = vadd.f32 %v3782_v21, %v1448_v30  ;;  %v3957_v12 = vadd.f32 %v3784_v14, %v1450_v50  ;;  %v3960_v0 = vadd.f32 %v3770_v19, %v1451_v39  ;;  %v1454_v18 = vadd.f32 %v1380_v62, %v3838_v11 }
 0x179   : > { %vm1595_vm6 = vcmp.gt.f32.partialorder %v3905_v44, 0.0  ;;  %v1658_v45 = vmul.f32 0.2, %v3908_v27  ;;  %v1660_v8 = vmul.f32 0.2, %v1532_v17  ;;  %v3966_v13 = vadd.f32 %v3770_v19, %v1455_v25 }
 0x17a   : > { %v1277_v61 = vpop.f32.mrf.mxu0  ;;  %v1390_v40 = vpop.f32.mrf.mxu1  ;;  %v1659_v36 = vmul.f32 0.2, %v3905_v44  ;;  %vm1594_vm7 = vcmp.gt.f32.partialorder %v3908_v27, 0.0  ;;  %vm1596_vm8 = vcmp.gt.f32.partialorder %v1532_v17, 0.0  ;;  %v1457_v34 = vadd.f32 %v1384_v46, %v3669_v1 }
 0x17b   : > { %v3974_v11 = vmul.f32 0.2, %v3946_v58  ;;  %v3977_v62 = vmul.f32 0.2, %v3949_v59  ;;  %v3980_v55 = vadd.f32 %v3772_v37, %v1453_v51  ;;  %v3983_v56 = vadd.f32 %v3782_v21, %v1452_v22 }
 0x17c   : > { %v1281_v60 = vpop.f32.mrf.mxu0  ;;  %v3968_v38 = vpop.f32.mrf.mxu1  ;;  %v3990_v57 = vmul.f32 0.2, %v3954_v35  ;;  %v3993_v1 = vmul.f32 0.2, %v3957_v12  ;;  %v3996_v46 = vmul.f32 0.2, %v3960_v0  ;;  %v3999_v42 = vadd.f32 %v3784_v14, %v1454_v18 }
 0x17d   : > { %vm1605_vm9 = vcmp.gt.f32.partialorder %v3966_v13, 0.0  ;;  %v1718_v54 = vsel %vm1590_vm1, %v3887_v5, %v1654_v28  ;;  %v1722_v43 = vsel %vm1594_vm7, %v3908_v27, %v1658_v45  ;;  %v1724_v53 = vsel %vm1596_vm8, %v1532_v17, %v1660_v8 }
 0x17e   : > { %v3985_v32 = vpop.f32.mrf.mxu0  ;;  %v3987_v23 = vpop.f32.mrf.mxu1  ;;  %vm1598_vm10 = vcmp.gt.f32.partialorder %v3954_v35, 0.0  ;;  %vm1600_vm11 = vcmp.gt.f32.partialorder %v3957_v12, 0.0  ;;  %v1543_v50 = vadd.f32 %v3772_v37, %v1457_v34  ;;  %v1774_v9 = vpack.c.bf16 %v1722_v43, %v1718_v54 }
 0x17f   : > { %v1720_v39 = vsel %vm1592_vm4, %v3897_v33, %v1656_v31  ;;  %v1717_v5 = vsel %vm1589_vm2, %v3871_v15, %v3890_v26  ;;  %vm1597_vm12 = vcmp.gt.f32.partialorder %v3946_v58, 0.0  ;;  %v1721_v28 = vsel %vm1593_vm5, %v3900_v63, %v1657_v20 }
 0x180   : > { %v4006_v16 = vpop.f32.mrf.mxu0  ;;  %v4008_v30 = vpop.f32.mrf.mxu1  ;;  %v1776_v27 = vpack.c.bf16 %v1724_v53, %v1720_v39  ;;  %v1719_v17 = vsel %vm1591_vm3, %v3874_v52, %v3893_v47  ;;  %v1723_v33 = vsel %vm1595_vm6, %v3905_v44, %v1659_v36  ;;  %vm1599_vm13 = vcmp.gt.f32.partialorder %v3949_v59, 0.0  ;;  %2245 = vmatprep.mubr.bf16.mxu0 %v1774_v9  ;;  %v4549_v44 = vld [vmem:[#allocation23_spill] sm:$0xff] }
 0x181   : > { %vm1601_vm14 = vcmp.gt.f32.partialorder %v3960_v0, 0.0  ;;  %v1669_v15 = vmul.f32 0.2, %v3966_v13  ;;  %v1773_v26 = vpack.c.bf16 %v1721_v28, %v1717_v5  ;;  %v1775_v31 = vpack.c.bf16 %v1723_v33, %v1719_v17 }
 0x182   : > { %v1456_v63 = vadd.f32 %v3926_v29, %v3672_v2  ;;  %2358 = vmatprep.mubr.bf16.mxu1 %v1776_v27  ;;  %v1458_v52 = vadd.f32 %v3928_v7, %v3675_v4  ;;  %v1459_v47 = vadd.f32 %v3937_v24, %v3678_v48  ;;  %v1461_v20 = vadd.f32 %v3939_v41, %v4549_v44  ;;  %v4043_v10 = vpop.f32.mrf.mxu0  ;;  %v4045_v51 = vpop.f32.mrf.mxu1 }
 0x183   : > { %v1460_v25 = vadd.f32 %v1277_v61, %v3846_v3  ;;  %vm1607_vm15 = vcmp.gt.f32.partialorder %v1543_v50, 0.0  ;;  %v1671_v22 = vmul.f32 0.2, %v1543_v50  ;;  %2246 = vmatmul.mubr.bf16.gmra.mxu0 %v1773_v26  ;;  %2359 = vmatmul.mubr.bf16.gmra.mxu1 %v1775_v31  ;;  %v1462_v4 = vadd.f32 %v1390_v40, %v3686_v6 }
 0x184   : > { %v4048_v2 = vadd.f32 %v3782_v21, %v1456_v63  ;;  %v4052_v48 = vadd.f32 %v3784_v14, %v1458_v52  ;;  %v1545_v29 = vadd.f32 %v3770_v19, %v1459_v47  ;;  %v1547_v3 = vadd.f32 %v3772_v37, %v1461_v20  ;;  %v1291_v18 = vpop.f32.mrf.mxu0  ;;  %v4065_v45 = vpop.f32.mrf.mxu1 }
 0x185   : > { %v1463_v7 = vadd.f32 %v1281_v60, %v3689_v49  ;;  %vm1603_vm0 = vcmp.gt.f32.partialorder %v3980_v55, 0.0  ;;  %v1667_v24 = vmul.f32 0.2, %v3980_v55  ;;  %v1666_v41 = vmul.f32 0.2, %v3983_v56 }
 0x186   : > { %v4061_v61 = vadd.f32 %v3782_v21, %v1460_v25  ;;  %vm1602_vm1 = vcmp.gt.f32.partialorder %v3983_v56, 0.0  ;;  %v1668_v6 = vmul.f32 0.2, %v3999_v42  ;;  %vm1609_vm2 = vcmp.gt.f32.partialorder %v1545_v29, 0.0  ;;  %v4109_v28 = vpop.f32.mrf.mxu0  ;;  %v4111_v17 = vpop.f32.mrf.mxu1  ;;  %v4555_v25 = vld [vmem:[#allocation29_spill] sm:$0xff] }
 0x187   : > { %v1673_v40 = vmul.f32 0.2, %v1545_v29  ;;  %vm1604_vm3 = vcmp.gt.f32.partialorder %v3999_v42, 0.0  ;;  %v4071_v49 = vsel %vm1605_vm9, %v3966_v13, %v1669_v15  ;;  %v4074_v8 = vsel %vm1607_vm15, %v1543_v50, %v1671_v22  ;;  %v4550_v50 = vld [vmem:[#allocation24_spill] sm:$0xff]  ;;  %v4551_v15 = vld [vmem:[#allocation25_spill] sm:$0xff] }
 0x188   : > { %v4077_v60 = vmul.f32 0.2, %v4048_v2  ;;  %v4080_v36 = vmul.f32 0.2, %v4052_v48  ;;  %vm1611_vm4 = vcmp.gt.f32.partialorder %v1547_v3, 0.0  ;;  %v4083_v34 = vadd.f32 %v3784_v14, %v1462_v4  ;;  %v1408_v44 = vpop.f32.mrf.mxu1  ;;  %v4556_v4 = vld [vmem:[#allocation30_spill] sm:$0xff] }
 0x189   : > { %v1549_v54 = vadd.f32 %v3770_v19, %v1463_v7  ;;  %v4086_v43 = vsel %vm1609_vm2, %v1545_v29, %v1673_v40  ;;  %v1675_v53 = vmul.f32 0.2, %v1547_v3  ;;  %v4089_v13 = vmul.f32 0.2, %v4061_v61 }
 0x18a   : > { %v1465_v9 = vadd.f32 %v3968_v38, %v4550_v50  ;;  %vm1606_vm5 = vcmp.gt.f32.partialorder %v4048_v2, 0.0  ;;  %vm1610_vm6 = vcmp.gt.f32.partialorder %v4061_v61, 0.0  ;;  %v1726_v39 = vsel %vm1598_vm10, %v3954_v35, %v3990_v57  ;;  %v1410_v50 = vpop.f32.mrf.mxu1 }
 0x18b   : > { %v1730_v5 = vsel %vm1602_vm1, %v3983_v56, %v1666_v41  ;;  %v1728_v27 = vsel %vm1600_vm11, %v3957_v12, %v3993_v1  ;;  %v1732_v38 = vsel %vm1604_vm3, %v3999_v42, %v1668_v6  ;;  %vm1608_vm7 = vcmp.gt.f32.partialorder %v4052_v48, 0.0 }
 0x18c   : > { %v1551_v35 = vadd.f32 %v3772_v37, %v1465_v9  ;;  %v1778_v57 = vpack.c.bf16 %v1730_v5, %v1726_v39  ;;  %v1780_v33 = vpack.c.bf16 %v1732_v38, %v1728_v27  ;;  %v1725_v56 = vsel %vm1597_vm12, %v3946_v58, %v3974_v11 }
 0x18d   : > { %vm1612_vm8 = vcmp.gt.f32.partialorder %v4083_v34, 0.0  ;;  %v1729_v12 = vsel %vm1601_vm14, %v3960_v0, %v3996_v46  ;;  %v1727_v1 = vsel %vm1599_vm13, %v3949_v59, %v3977_v62  ;;  %v1731_v42 = vsel %vm1603_vm0, %v3980_v55, %v1667_v24  ;;  %v4552_v46 = vld [vmem:[#allocation26_spill] sm:$0xff]  ;;  %v4553_v62 = vld [vmem:[#allocation27_spill] sm:$0xff]  ;;  %v4554_v55 = vld [vmem:[#allocation28_spill] sm:$0xff] }
 0x18e   : > { %v1464_v26 = vadd.f32 %v3985_v32, %v4551_v15  ;;  %v1676_v58 = vmul.f32 0.2, %v4083_v34  ;;  %v1677_v11 = vmul.f32 0.2, %v1549_v54  ;;  %2255 = vmatprep.mubr.bf16.mxu0 %v1778_v57  ;;  %2368 = vmatprep.mubr.bf16.mxu1 %v1780_v33  ;;  %v1777_v31 = vpack.c.bf16 %v1729_v12, %v1725_v56  ;;  %v1295_v32 = vpop.f32.mrf.mxu0  ;;  %v4558_v57 = vld [vmem:[#allocation32_spill] sm:$0xff] }
 0x18f   : > { %v1779_v63 = vpack.c.bf16 %v1731_v42, %v1727_v1  ;;  %v1466_v59 = vadd.f32 %v3987_v23, %v4552_v46  ;;  %v1467_v52 = vadd.f32 %v4006_v16, %v4553_v62  ;;  %v1469_v47 = vadd.f32 %v4008_v30, %v4554_v55  ;;  %v4561_v62 = vld [vmem:[#allocation35_spill] sm:$0xff] }
 0x190   : > { %v4135_v0 = vadd.f32 %v3782_v21, %v1464_v26  ;;  %vm1613_vm9 = vcmp.gt.f32.partialorder %v1549_v54, 0.0  ;;  %v1679_v20 = vmul.f32 0.2, %v1551_v35  ;;  %2256 = vmatmul.mubr.bf16.gmra.mxu0 %v1777_v31  ;;  %v1468_v22 = vadd.f32 %v4043_v10, %v4555_v25  ;;  %v4557_v10 = vld [vmem:[#allocation31_spill] sm:$0xff] }
 0x191   : > { %2369 = vmatmul.mubr.bf16.gmra.mxu1 %v1779_v63  ;;  %v1470_v29 = vadd.f32 %v4045_v51, %v4556_v4  ;;  %v1739_v23 = vsel %vm1611_vm4, %v1547_v3, %v1675_v53  ;;  %vm1615_vm10 = vcmp.gt.f32.partialorder %v1551_v35, 0.0  ;;  %v4149_v16 = vadd.f32 %v3784_v14, %v1466_v59  ;;  %v1297_v53 = vpop.f32.mrf.mxu0  ;;  %v4560_v63 = vld [vmem:[#allocation34_spill] sm:$0xff] }
 0x192   : > { %v1553_v30 = vadd.f32 %v3770_v19, %v1467_v52  ;;  %v1555_v7 = vadd.f32 %v3772_v37, %v1469_v47  ;;  %v4154_v24 = vadd.f32 %v3782_v21, %v1468_v22  ;;  %v1471_v6 = vadd.f32 %v1291_v18, %v4557_v10  ;;  %v4564_v47 = vld [vmem:[#allocation38_spill] sm:$0xff] }
 0x193   : > { %v4157_v41 = vadd.f32 %v3784_v14, %v1470_v29  ;;  %v4160_v40 = vsel %vm1613_vm9, %v1549_v54, %v1677_v11  ;;  %v4163_v51 = vmul.f32 0.2, %v4135_v0  ;;  %v4165_v9 = vsel %vm1615_vm10, %v1551_v35, %v1679_v20  ;;  %v1301_v26 = vpop.f32.mrf.mxu0 }
 0x194   : > { %vm1617_vm11 = vcmp.gt.f32.partialorder %v1553_v30, 0.0  ;;  %v1681_v3 = vmul.f32 0.2, %v1553_v30  ;;  %v4168_v39 = vmul.f32 0.2, %v4149_v16  ;;  %vm1619_vm12 = vcmp.gt.f32.partialorder %v1555_v7, 0.0 }
 0x195   : > { %v1683_v5 = vmul.f32 0.2, %v1555_v7  ;;  %vm1614_vm13 = vcmp.gt.f32.partialorder %v4135_v0, 0.0  ;;  %vm1618_vm14 = vcmp.gt.f32.partialorder %v4154_v24, 0.0  ;;  %v1682_v18 = vmul.f32 0.2, %v4154_v24  ;;  %v1303_v20 = vpop.f32.mrf.mxu0 }
 0x196   : > { %v4171_v27 = vsel %vm1617_vm11, %v1553_v30, %v1681_v3  ;;  %v4176_v54 = vmul.f32 0.2, %v4157_v41  ;;  %v1557_v38 = vadd.f32 %v3770_v19, %v1471_v6  ;;  %v1473_v33 = vadd.f32 %v4065_v45, %v4558_v57  ;;  %v1414_v45 = vpop.f32.mrf.mxu1 }
 0x197   : > { %v4179_v35 = vsel %vm1619_vm12, %v1555_v7, %v1683_v5  ;;  %v1734_v56 = vsel %vm1606_vm5, %v4048_v2, %v4077_v60  ;;  %v1738_v12 = vsel %vm1610_vm6, %v4061_v61, %v4089_v13  ;;  %v1736_v15 = vsel %vm1608_vm7, %v4052_v48, %v4080_v36  ;;  %v4559_v36 = vld [vmem:[#allocation33_spill] sm:$0xff]  ;;  %v1305_v5 = vpop.f32.mrf.mxu0 }
 0x198   : > { %vm1621_vm15 = vcmp.gt.f32.partialorder %v1557_v38, 0.0  ;;  %v1685_v1 = vmul.f32 0.2, %v1557_v38  ;;  %v1782_v42 = vpack.c.bf16 %v1738_v12, %v1734_v56  ;;  %vm1616_vm0 = vcmp.gt.f32.partialorder %v4149_v16, 0.0  ;;  %v1416_v25 = vpop.f32.mrf.mxu1 }
 0x199   : > { %vm1620_vm1 = vcmp.gt.f32.partialorder %v4157_v41, 0.0  ;;  %v1559_v2 = vadd.f32 %v3772_v37, %v1473_v33  ;;  %v1740_v61 = vsel %vm1612_vm8, %v4083_v34, %v1676_v58  ;;  %v1781_v60 = vpack.c.bf16 %v4086_v43, %v4071_v49  ;;  %v4562_v58 = vld [vmem:[#allocation36_spill] sm:$0xff]  ;;  %v4563_v43 = vld [vmem:[#allocation37_spill] sm:$0xff] }
 0x19a   : > { %v1783_v13 = vpack.c.bf16 %v1739_v23, %v4074_v8  ;;  %v4204_v11 = vsel %vm1621_vm15, %v1557_v38, %v1685_v1  ;;  %2265 = vmatprep.mubr.bf16.mxu0 %v1782_v42  ;;  %v1784_v48 = vpack.c.bf16 %v1740_v61, %v1736_v15  ;;  %v1472_v31 = vadd.f32 %v4109_v28, %v4559_v36  ;;  %v1418_v38 = vpop.f32.mrf.mxu1  ;;  %v4568_v36 = vld [vmem:[#allocation43_spill] sm:$0xff] }
 0x19b   : > { %v1474_v46 = vadd.f32 %v4111_v17, %v4560_v63  ;;  %vm1623_vm2 = vcmp.gt.f32.partialorder %v1559_v2, 0.0  ;;  %v1687_v59 = vmul.f32 0.2, %v1559_v2  ;;  %2266 = vmatmul.mubr.bf16.gmra.mxu0 %v1781_v60  ;;  %v1475_v34 = vadd.f32 %v1295_v32, %v4561_v62  ;;  %v4569_v63 = vld [vmem:[#allocation45_spill] sm:$0xff] }
 0x19c   : > { %v1477_v52 = vadd.f32 %v1408_v44, %v4562_v58  ;;  %2378 = vmatprep.mubr.bf16.mxu1 %v1784_v48  ;;  %v1558_v49 = vadd.f32 %v3782_v21, %v1472_v31  ;;  %v1476_v55 = vadd.f32 %v1297_v53, %v4563_v43  ;;  %v1478_v28 = vadd.f32 %v1410_v50, %v4564_v47  ;;  %v4565_v44 = vld [vmem:[#allocation40_spill] sm:$0xff]  ;;  %v4566_v53 = vld [vmem:[#allocation41_spill] sm:$0xff]  ;;  %v1420_v61 = vpop.f32.mrf.mxu1 }
 0x19d   : > { %v4214_v8 = vadd.f32 %v3784_v14, %v1474_v46  ;;  %v4218_v17 = vsel %vm1623_vm2, %v1559_v2, %v1687_v59  ;;  %2379 = vmatmul.mubr.bf16.gmra.mxu1 %v1783_v13  ;;  %v1561_v22 = vadd.f32 %v3770_v19, %v1475_v34  ;;  %v1479_v4 = vadd.f32 %v1301_v26, %v4565_v44  ;;  %v1307_v2 = vpop.f32.mrf.mxu0 }
 0x19e   : > { %v1563_v32 = vadd.f32 %v3772_v37, %v1477_v52  ;;  %vm1622_vm3 = vcmp.gt.f32.partialorder %v1558_v49, 0.0  ;;  %v1686_v29 = vmul.f32 0.2, %v1558_v49  ;;  %v1562_v10 = vadd.f32 %v3782_v21, %v1476_v55 }
 0x19f   : > { %vm1624_vm4 = vcmp.gt.f32.partialorder %v4214_v8, 0.0  ;;  %v1688_v23 = vmul.f32 0.2, %v4214_v8  ;;  %vm1625_vm5 = vcmp.gt.f32.partialorder %v1561_v22, 0.0  ;;  %v1689_v30 = vmul.f32 0.2, %v1561_v22 }
 0x1a0   : > { %vm1627_vm6 = vcmp.gt.f32.partialorder %v1563_v32, 0.0  ;;  %v1691_v7 = vmul.f32 0.2, %v1563_v32  ;;  %v4227_v6 = vadd.f32 %v3784_v14, %v1478_v28  ;;  %v1565_v3 = vadd.f32 %v3770_v19, %v1479_v4 }
 0x1a1   : > { %v1481_v50 = vadd.f32 %v1414_v45, %v4566_v53  ;;  %v4231_v57 = vsel %vm1625_vm5, %v1561_v22, %v1689_v30  ;;  %v1742_v56 = vsel %vm1614_vm13, %v4135_v0, %v4163_v51  ;;  %v1746_v12 = vsel %vm1618_vm14, %v4154_v24, %v1682_v18 }
 0x1a2   : > { %v4233_v33 = vsel %vm1627_vm6, %v1563_v32, %v1691_v7  ;;  %vm1626_vm7 = vcmp.gt.f32.partialorder %v1562_v10, 0.0  ;;  %v1690_v1 = vmul.f32 0.2, %v1562_v10  ;;  %vm1628_vm8 = vcmp.gt.f32.partialorder %v4227_v6, 0.0 }
 0x1a3   : > { %v1692_v42 = vmul.f32 0.2, %v4227_v6  ;;  %vm1629_vm9 = vcmp.gt.f32.partialorder %v1565_v3, 0.0  ;;  %v1693_v15 = vmul.f32 0.2, %v1565_v3  ;;  %v1567_v26 = vadd.f32 %v3772_v37, %v1481_v50 }
 0x1a4   : > { %v1786_v45 = vpack.c.bf16 %v1746_v12, %v1742_v56  ;;  %v1744_v0 = vsel %vm1616_vm0, %v4149_v16, %v4168_v39  ;;  %v1748_v24 = vsel %vm1620_vm1, %v4157_v41, %v4176_v54  ;;  %v1785_v51 = vpack.c.bf16 %v4171_v27, %v4160_v40  ;;  %v4567_v16 = vld [vmem:[#allocation42_spill] sm:$0xff]  ;;  %v4570_v54 = vld [vmem:[#allocation12_spill] sm:$0xff]  ;;  %v4571_v27 = vld [vmem:[#allocation13_spill] sm:$0xff] }
 0x1a5   : > { %v1787_v18 = vpack.c.bf16 %v4179_v35, %v4165_v9  ;;  %v1757_v60 = vsel %vm1629_vm9, %v1565_v3, %v1693_v15  ;;  %vm1631_vm10 = vcmp.gt.f32.partialorder %v1567_v26, 0.0  ;;  %v1695_v13 = vmul.f32 0.2, %v1567_v26  ;;  %v4572_v35 = vld [vmem:[#allocation14_spill] sm:$0xff] }
 0x1a6   : > { %2275 = vmatprep.mubr.bf16.mxu0 %v1786_v45  ;;  %v1788_v48 = vpack.c.bf16 %v1748_v24, %v1744_v0  ;;  %v1480_v39 = vadd.f32 %v1303_v20, %v4567_v16  ;;  %v1482_v31 = vadd.f32 %v1416_v25, %v4568_v36  ;;  %v1483_v41 = vadd.f32 %v1305_v5, %v4569_v63 }
 0x1a7   : > { %2276 = vmatmul.mubr.bf16.gmra.mxu0 %v1785_v51  ;;  %v1485_v46 = vadd.f32 %v1418_v38, %v4570_v54  ;;  %v1759_v40 = vsel %vm1631_vm10, %v1567_v26, %v1695_v13  ;;  %v1484_v9 = vadd.f32 %v1307_v2, %v4571_v27  ;;  %v1486_v59 = vadd.f32 %v1420_v61, %v4572_v35 }
 0x1a8   : > { %2388 = vmatprep.mubr.bf16.mxu1 %v1788_v48  ;;  %v1750_v62 = vsel %vm1622_vm3, %v1558_v49, %v1686_v29  ;;  %v1566_v34 = vadd.f32 %v3782_v21, %v1480_v39  ;;  %v1568_v58 = vadd.f32 %v3784_v14, %v1482_v31  ;;  %v1569_v52 = vadd.f32 %v3770_v19, %v1483_v41 }
 0x1a9   : > { %2389 = vmatmul.mubr.bf16.gmra.mxu1 %v1787_v18  ;;  %v1571_v43 = vadd.f32 %v3772_v37, %v1485_v46  ;;  %v1570_v55 = vadd.f32 %v3782_v21, %v1484_v9  ;;  %v1572_v47 = vadd.f32 %v3784_v14, %v1486_v59  ;;  %v1754_v28 = vsel %vm1626_vm7, %v1562_v10, %v1690_v1 }
 0x1aa   : > { %v1752_v20 = vsel %vm1624_vm4, %v4214_v8, %v1688_v23  ;;  %vm1630_vm11 = vcmp.gt.f32.partialorder %v1566_v34, 0.0  ;;  %v1694_v49 = vmul.f32 0.2, %v1566_v34  ;;  %vm1632_vm12 = vcmp.gt.f32.partialorder %v1568_v58, 0.0 }
 0x1ab   : > { %v1696_v25 = vmul.f32 0.2, %v1568_v58  ;;  %vm1633_vm13 = vcmp.gt.f32.partialorder %v1569_v52, 0.0  ;;  %v1697_v22 = vmul.f32 0.2, %v1569_v52  ;;  %vm1635_vm14 = vcmp.gt.f32.partialorder %v1571_v43, 0.0 }
 0x1ac   : > { %v1699_v19 = vmul.f32 0.2, %v1571_v43  ;;  %vm1634_vm15 = vcmp.gt.f32.partialorder %v1570_v55, 0.0  ;;  %v1698_v37 = vmul.f32 0.2, %v1570_v55  ;;  %vm1636_vm0 = vcmp.gt.f32.partialorder %v1572_v47, 0.0 }
 0x1ad   : > { %v1700_v21 = vmul.f32 0.2, %v1572_v47  ;;  %v1761_v32 = vsel %vm1633_vm13, %v1569_v52, %v1697_v22  ;;  %v1790_v44 = vpack.c.bf16 %v1754_v28, %v1750_v62  ;;  %v1756_v4 = vsel %vm1628_vm8, %v4227_v6, %v1692_v42 }
 0x1ae   : > { %v1763_v14 = vsel %vm1635_vm14, %v1571_v43, %v1699_v19  ;;  %v1792_v8 = vpack.c.bf16 %v1756_v4, %v1752_v20  ;;  %v1789_v29 = vpack.c.bf16 %v4231_v57, %v4204_v11  ;;  %v1791_v23 = vpack.c.bf16 %v4233_v33, %v4218_v17  ;;  %v1861_v11 = vld [vmem:[%s4466_s8] sm:$0x3]  ;;  %v4573_v17 = vld [vmem:[#allocation44_spill] sm:$0xff] }
 0x1af   : > { %v1758_v30 = vsel %vm1630_vm11, %v1566_v34, %v1694_v49  ;;  %2285 = vmatprep.mubr.bf16.mxu0 %v1790_v44  ;;  %v1762_v7 = vsel %vm1634_vm15, %v1570_v55, %v1698_v37  ;;  %v1760_v10 = vsel %vm1632_vm12, %v1568_v58, %v1696_v25  ;;  %v1764_v3 = vsel %vm1636_vm0, %v1572_v47, %v1700_v21  ;;  %v4574_v57 = vld [vmem:[#allocation39_spill] sm:$0xff] }
 0x1b0   : > { %v1793_v53 = vpack.c.bf16 %v1761_v32, %v1757_v60  ;;  %2398 = vmatprep.mubr.bf16.mxu1 %v1792_v8  ;;  %2286 = vmatmul.mubr.bf16.gmra.mxu0 %v1789_v29  ;;  %v1794_v50 = vpack.c.bf16 %v1762_v7, %v1758_v30  ;;  %v1796_v5 = vpack.c.bf16 %v1764_v3, %v1760_v10  ;;  %v4575_v33 = vsub.s32 1, %v4574_v57  ;;  %v4316_v44 = vld.sshfl [vmem:[%s4467_s9] sm:$0x11 pattern:$0x75316420] }
 0x1b1   : > { %v1795_v6 = vpack.c.bf16 %v1763_v14, %v1759_v40  ;;  %2399 = vmatmul.mubr.bf16.gmra.mxu1 %v1791_v23  ;;  %v4287_v38 = vrot.slane %v1861_v11, %v4573_v17  ;;  %4580 = vst [vmem:[#allocation5_spill] sm:$0xff] %v4316_v44  ;;  %v3010_v4 = vmov 1966171168   ;;  %v2550_v30 = vcombine.high %v4316_v44, %v4316_v44 }
 0x1b2   : > { %2295 = vmatprep.mubr.bf16.mxu0 %v1794_v50  ;;  %2408 = vmatprep.mubr.bf16.mxu1 %v1796_v5  ;;  %v4291_v56 = vrot.slane %v1861_v11, %v4575_v33  ;;  %v2552_v8 = vunpack.c.l.s4 %v3010_v4 }
 0x1b4   : > { %v2553_v50 = vunpack.c.0.s8 %v2552_v8 }
 0x1b8   : > { %2296 = vmatmul.mubr.bf16.gmra.mxu0 %v1793_v53 }
 0x1b9   : > { %2409 = vmatmul.mubr.bf16.gmra.mxu1 %v1795_v6 }
 0x22d   : > { %v2227_v12 = vpop.f32.mrf.mxu0  ;;  %v2340_v1 = vpop.f32.mrf.mxu1 }
 0x22e   : > { %v2228_v42 = vadd.f32 %v2227_v12, %v4287_v38 }
 0x22f   : > { %v2229_v15 = vpop.f32.mrf.mxu0  ;;  %v2342_v26 = vpop.f32.mrf.mxu1 }
 0x230   : > { %v2341_v45 = vadd.f32 %v2340_v1, %v2228_v42  ;;  %v2230_v0 = vadd.f32 %v2229_v15, %v4291_v56  ;;  %v4332_v1 = vsub.s32 %v2553_v50, %v4574_v57 }
 0x231   : > { %v2231_v24 = vpop.f32.mrf.mxu0  ;;  %v2344_v51 = vpop.f32.mrf.mxu1 }
 0x232   : > { %v2343_v18 = vadd.f32 %v2342_v26, %v2230_v0  ;;  %v2232_v2 = vadd.f32 %v2231_v24, %v4287_v38  ;;  %v2451_v13 = vmul.f32 0.2, %v2341_v45  ;;  %vm2419_vm1 = vcmp.gt.f32.partialorder %v2341_v45, 0.0  ;;  %4581 = vst [vmem:[#allocation6_spill] sm:$0xff] %v4332_v1 }
 0x233   : > { %v2233_v61 = vpop.f32.mrf.mxu0  ;;  %v2346_v60 = vpop.f32.mrf.mxu1 }
 0x234   : > { %v2345_v48 = vadd.f32 %v2344_v51, %v2232_v2  ;;  %v2234_v16 = vadd.f32 %v2233_v61, %v4291_v56  ;;  %v4297_v41 = vsel %vm2419_vm1, %v2341_v45, %v2451_v13  ;;  %v2452_v54 = vmul.f32 0.2, %v2343_v18 }
 0x235   : > { %4576 = vst [vmem:[#allocation3_spill] sm:$0xff] %v4297_v41  ;;  %vm2420_vm3 = vcmp.gt.f32.partialorder %v2343_v18, 0.0  ;;  %v2564_v51 = vrot.slane %v2550_v30, %v4332_v1 }
 0x236   : > { %vm2421_vm2 = vcmp.gt.f32.partialorder %v2345_v48, 0.0  ;;  %v2453_v39 = vmul.f32 0.2, %v2345_v48  ;;  %v2347_v36 = vadd.f32 %v2346_v60, %v2234_v16  ;;  %v2237_v31 = vpop.f32.mrf.mxu0  ;;  %v2350_v63 = vpop.f32.mrf.mxu1  ;;  %v4308_v28 = vsel %vm2420_vm3, %v2343_v18, %v2452_v54  ;;  %v2532_v18 = vld [vmem:[#allocation2] sm:$0x1] }
 0x237   : > { %v2238_v40 = vadd.f32 %v2237_v31, %v4287_v38  ;;  %4579 = vst [vmem:[#allocation16_spill] sm:$0xff] %v4308_v28  ;;  %2535 = vperm.xlu0 %2858, %v2532_v18   ;;  %2599 = vmatprep.mubr.bf16.mxu0 %v2564_v51 }
 0x238   : > { %v4299_v46 = vsel %vm2421_vm2, %v2345_v48, %v2453_v39  ;;  %vm2422_vm4 = vcmp.gt.f32.partialorder %v2347_v36, 0.0  ;;  %v2454_v9 = vmul.f32 0.2, %v2347_v36  ;;  %v2239_v35 = vpop.f32.mrf.mxu0  ;;  %v2352_v59 = vpop.f32.mrf.mxu1 }
 0x239   : > { %4577 = vst [vmem:[#allocation4_spill] sm:$0xff] %v4299_v46  ;;  %v2351_v62 = vadd.f32 %v2350_v63, %v2238_v40  ;;  %v2240_v34 = vadd.f32 %v2239_v35, %v4291_v56 }
 0x23a   : > { %v2241_v58 = vpop.f32.mrf.mxu0  ;;  %v2354_v52 = vpop.f32.mrf.mxu1  ;;  %v4305_v43 = vsel %vm2422_vm4, %v2347_v36, %v2454_v9 }
 0x23b   : > { %4578 = vst [vmem:[#allocation15_spill] sm:$0xff] %v4305_v43  ;;  %v2353_v55 = vadd.f32 %v2352_v59, %v2240_v34  ;;  %v2242_v47 = vadd.f32 %v2241_v58, %v4287_v38  ;;  %v2455_v25 = vmul.f32 0.2, %v2351_v62  ;;  %vm2423_vm5 = vcmp.gt.f32.partialorder %v2351_v62, 0.0 }
 0x23c   : > { %v2243_v20 = vpop.f32.mrf.mxu0  ;;  %v2356_v37 = vpop.f32.mrf.mxu1 }
 0x23d   : > { %v2355_v22 = vadd.f32 %v2354_v52, %v2242_v47  ;;  %v2244_v19 = vadd.f32 %v2243_v20, %v4291_v56  ;;  %v2456_v32 = vmul.f32 0.2, %v2353_v55  ;;  %v4318_v29 = vsel %vm2423_vm5, %v2351_v62, %v2455_v25 }
 0x23e   : > { %vm2424_vm7 = vcmp.gt.f32.partialorder %v2353_v55, 0.0 }
 0x23f   : > { %vm2425_vm6 = vcmp.gt.f32.partialorder %v2355_v22, 0.0  ;;  %v2457_v21 = vmul.f32 0.2, %v2355_v22  ;;  %v2357_v14 = vadd.f32 %v2356_v37, %v2244_v19  ;;  %v4327_v33 = vsel %vm2424_vm7, %v2353_v55, %v2456_v32 }
 0x241   : > { %v4320_v23 = vsel %vm2425_vm6, %v2355_v22, %v2457_v21  ;;  %vm2426_vm8 = vcmp.gt.f32.partialorder %v2357_v14, 0.0  ;;  %v2458_v10 = vmul.f32 0.2, %v2357_v14 }
 0x243   : > { %v2247_v3 = vpop.f32.mrf.mxu0  ;;  %v2360_v53 = vpop.f32.mrf.mxu1  ;;  %v4329_v12 = vsel %vm2426_vm8, %v2357_v14, %v2458_v10 }
 0x244   : > { %v2248_v5 = vadd.f32 %v2247_v3, %v4287_v38 }
 0x245   : > { %v2249_v6 = vpop.f32.mrf.mxu0  ;;  %v2362_v11 = vpop.f32.mrf.mxu1 }
 0x246   : > { %v2361_v42 = vadd.f32 %v2360_v53, %v2248_v5  ;;  %v2250_v15 = vadd.f32 %v2249_v6, %v4291_v56 }
 0x247   : > { %v2251_v45 = vpop.f32.mrf.mxu0  ;;  %v2364_v0 = vpop.f32.mrf.mxu1 }
 0x248   : > { %v2363_v2 = vadd.f32 %v2362_v11, %v2250_v15  ;;  %v2252_v61 = vadd.f32 %v2251_v45, %v4287_v38  ;;  %v2459_v60 = vmul.f32 0.2, %v2361_v42  ;;  %vm2427_vm9 = vcmp.gt.f32.partialorder %v2361_v42, 0.0 }
 0x249   : > { %v2253_v57 = vpop.f32.mrf.mxu0  ;;  %v2366_v16 = vpop.f32.mrf.mxu1 }
 0x24a   : > { %v2365_v13 = vadd.f32 %v2364_v0, %v2252_v61  ;;  %v2254_v48 = vadd.f32 %v2253_v57, %v4291_v56  ;;  %v2460_v36 = vmul.f32 0.2, %v2363_v2  ;;  %v4342_v63 = vsel %vm2427_vm9, %v2361_v42, %v2459_v60 }
 0x24b   : > { %vm2428_vm11 = vcmp.gt.f32.partialorder %v2363_v2, 0.0 }
 0x24c   : > { %vm2429_vm10 = vcmp.gt.f32.partialorder %v2365_v13, 0.0  ;;  %v2461_v39 = vmul.f32 0.2, %v2365_v13  ;;  %v2367_v31 = vadd.f32 %v2366_v16, %v2254_v48  ;;  %v4353_v52 = vsel %vm2428_vm11, %v2363_v2, %v2460_v36 }
 0x24e   : > { %v4344_v54 = vsel %vm2429_vm10, %v2365_v13, %v2461_v39  ;;  %vm2430_vm12 = vcmp.gt.f32.partialorder %v2367_v31, 0.0  ;;  %v2462_v9 = vmul.f32 0.2, %v2367_v31 }
 0x250   : > { %v2257_v35 = vpop.f32.mrf.mxu0  ;;  %v4355_v55 = vsel %vm2430_vm12, %v2367_v31, %v2462_v9 }
 0x251   : > { %v2370_v59 = vpop.f32.mrf.mxu1  ;;  %v2258_v62 = vadd.f32 %v2257_v35, %v4287_v38 }
 0x252   : > { %v4349_v34 = vpop.f32.mrf.mxu0 }
 0x253   : > { %v4351_v58 = vpop.f32.mrf.mxu1  ;;  %v2371_v47 = vadd.f32 %v2370_v59, %v2258_v62 }
 0x254   : > { %v2261_v25 = vpop.f32.mrf.mxu0 }
 0x255   : > { %v2374_v22 = vpop.f32.mrf.mxu1  ;;  %v2262_v19 = vadd.f32 %v2261_v25, %v4287_v38  ;;  %v2463_v21 = vmul.f32 0.2, %v2371_v47  ;;  %vm2431_vm13 = vcmp.gt.f32.partialorder %v2371_v47, 0.0 }
 0x256   : > { %v4360_v37 = vpop.f32.mrf.mxu0 }
 0x257   : > { %v2375_v32 = vadd.f32 %v2374_v22, %v2262_v19  ;;  %v4362_v14 = vpop.f32.mrf.mxu1  ;;  %v4366_v30 = vsel %vm2431_vm13, %v2371_v47, %v2463_v21 }
 0x259   : > { %vm2433_vm14 = vcmp.gt.f32.partialorder %v2375_v32, 0.0  ;;  %v2465_v4 = vmul.f32 0.2, %v2375_v32 }
 0x25b   : > { %v4364_v8 = vpop.f32.mrf.mxu0  ;;  %v4368_v10 = vsel %vm2433_vm14, %v2375_v32, %v2465_v4 }
 0x25d   : > { %v4372_v53 = vpop.f32.mrf.mxu1  ;;  %v4374_v50 = vpop.f32.mrf.mxu0 }
 0x25f   : > { %v4376_v5 = vpop.f32.mrf.mxu1  ;;  %v4378_v6 = vpop.f32.mrf.mxu0 }
 0x261   : > { %v4380_v11 = vpop.f32.mrf.mxu1  ;;  %v4382_v42 = vpop.f32.mrf.mxu0 }
 0x262   : > { %v2274_v43 = vadd.f32 %v4382_v42, %v4291_v56 }
 0x263   : > { %v4384_v15 = vpop.f32.mrf.mxu1 }
 0x267   : > { %v4386_v45 = vpop.f32.mrf.mxu0 }
 0x269   : > { %v4388_v0 = vpop.f32.mrf.mxu1  ;;  %v2279_v51 = vpop.f32.mrf.mxu0 }
 0x26a   : > { %v2280_v17 = vadd.f32 %v2279_v51, %v4291_v56 }
 0x26b   : > { %v2392_v18 = vpop.f32.mrf.mxu1  ;;  %v2281_v2 = vpop.f32.mrf.mxu0 }
 0x26d   : > { %v4390_v61 = vpop.f32.mrf.mxu1  ;;  %v2283_v57 = vpop.f32.mrf.mxu0 }
 0x26f   : > { %v2396_v60 = vpop.f32.mrf.mxu1 }
 0x270   : > { %v2287_v13 = vpop.f32.mrf.mxu0 }
 0x271   : > { %v2400_v48 = vpop.f32.mrf.mxu1 }
 0x272   : > { %v2289_v16 = vpop.f32.mrf.mxu0 }
 0x273   : > { %v2402_v39 = vpop.f32.mrf.mxu1  ;;  %v2290_v32 = vadd.f32 %v2289_v16, %v4291_v56 }
 0x274   : > { %v2291_v36 = vpop.f32.mrf.mxu0 }
 0x275   : > { %v2404_v31 = vpop.f32.mrf.mxu1  ;;  %v2403_v3 = vadd.f32 %v2402_v39, %v2290_v32  ;;  %v2393_v32 = vadd.f32 %v2392_v18, %v2280_v17  ;;  %v2270_v17 = vadd.f32 %v4374_v50, %v4291_v56 }
 0x276   : > { %v2293_v9 = vpop.f32.mrf.mxu0 }
 0x277   : > { %v2406_v35 = vpop.f32.mrf.mxu1  ;;  %v2294_v47 = vadd.f32 %v2293_v9, %v4291_v56  ;;  %vm2444_vm4 = vcmp.gt.f32.partialorder %v2403_v3, 0.0  ;;  %vm2440_vm8 = vcmp.gt.f32.partialorder %v2393_v32, 0.0 }
 0x278   : > { %v2297_v59 = vpop.f32.mrf.mxu0 }
 0x279   : > { %v2410_v62 = vpop.f32.mrf.mxu1  ;;  %v2298_v22 = vadd.f32 %v2297_v59, %v4287_v38  ;;  %v2407_v49 = vadd.f32 %v2406_v35, %v2294_v47  ;;  %v2284_v59 = vadd.f32 %v2283_v57, %v4291_v56  ;;  %v2288_v35 = vadd.f32 %v2287_v13, %v4287_v38 }
 0x27a   : > { %v2299_v25 = vpop.f32.mrf.mxu0 }
 0x27b   : > { %v2300_v19 = vadd.f32 %v2299_v25, %v4291_v56  ;;  %v2412_v21 = vpop.f32.mrf.mxu1  ;;  %v2411_v40 = vadd.f32 %v2410_v62, %v2298_v22  ;;  %v2292_v25 = vadd.f32 %v2291_v36, %v4287_v38  ;;  %v2478_v44 = vmul.f32 0.2, %v2407_v49 }
 0x27c   : > { %v2301_v4 = vpop.f32.mrf.mxu0  ;;  %vm2446_vm0 = vcmp.gt.f32.partialorder %v2407_v49, 0.0  ;;  %v2397_v57 = vadd.f32 %v2396_v60, %v2284_v59  ;;  %v2401_v22 = vadd.f32 %v2400_v48, %v2288_v35  ;;  %v2264_v48 = vadd.f32 %v4360_v37, %v4291_v56 }
 0x27d   : > { %v2302_v24 = vadd.f32 %v2301_v4, %v4287_v38  ;;  %v2414_v27 = vpop.f32.mrf.mxu1  ;;  %v2413_v7 = vadd.f32 %v2412_v21, %v2300_v19  ;;  %v2479_v62 = vmul.f32 0.2, %v2411_v40  ;;  %vm2447_vm2 = vcmp.gt.f32.partialorder %v2411_v40, 0.0 }
 0x27e   : > { %v2303_v26 = vpop.f32.mrf.mxu0  ;;  %v2510_v47 = vsel %vm2446_vm0, %v2407_v49, %v2478_v44  ;;  %vm2442_vm6 = vcmp.gt.f32.partialorder %v2397_v57, 0.0  ;;  %v2475_v49 = vmul.f32 0.2, %v2401_v22  ;;  %v2472_v44 = vmul.f32 0.2, %v2393_v32 }
 0x27f   : > { %v2415_v20 = vadd.f32 %v2414_v27, %v2302_v24  ;;  %v2304_v9 = vadd.f32 %v2303_v26, %v4291_v56  ;;  %v2416_v16 = vpop.f32.mrf.mxu1  ;;  %v2480_v41 = vmul.f32 0.2, %v2413_v7  ;;  %vm2448_vm1 = vcmp.gt.f32.partialorder %v2413_v7, 0.0 }
 0x280   : > { %v2476_v27 = vmul.f32 0.2, %v2403_v3  ;;  %v2405_v24 = vadd.f32 %v2404_v31, %v2292_v25  ;;  %v2511_v19 = vsel %vm2447_vm2, %v2411_v40, %v2479_v62  ;;  %v2474_v31 = vmul.f32 0.2, %v2397_v57 }
 0x281   : > { %v2481_v1 = vmul.f32 0.2, %v2415_v20  ;;  %vm2449_vm15 = vcmp.gt.f32.partialorder %v2415_v20, 0.0  ;;  %v2417_v4 = vadd.f32 %v2416_v16, %v2304_v9  ;;  %v2512_v39 = vsel %vm2448_vm1, %v2413_v7, %v2480_v41 }
 0x282   : > { %v2508_v13 = vsel %vm2444_vm4, %v2403_v3, %v2476_v27  ;;  %v2282_v16 = vadd.f32 %v2281_v2, %v4287_v38  ;;  %v2477_v46 = vmul.f32 0.2, %v2405_v24  ;;  %vm2445_vm5 = vcmp.gt.f32.partialorder %v2405_v24, 0.0 }
 0x283   : > { %vm2450_vm3 = vcmp.gt.f32.partialorder %v2417_v4, 0.0  ;;  %v2482_v26 = vmul.f32 0.2, %v2417_v4  ;;  %v2513_v51 = vsel %vm2449_vm15, %v2415_v20, %v2481_v1  ;;  %v2529_v28 = vpack.c.bf16 %v2510_v47, %v2508_v13 }
 0x284   : > { %v2530_v9 = vpack.c.bf16 %v2513_v51, %v2511_v19  ;;  %v2278_v41 = vadd.f32 %v4386_v45, %v4287_v38  ;;  %vm2443_vm7 = vcmp.gt.f32.partialorder %v2401_v22, 0.0  ;;  %v2395_v7 = vadd.f32 %v4390_v61, %v2282_v16  ;;  %v4587_v19 = vld [vmem:[#allocation15_spill] sm:$0xff] }
 0x285   : > { %v2514_v36 = vsel %vm2450_vm3, %v2417_v4, %v2482_v26  ;;  %v2509_v1 = vsel %vm2445_vm5, %v2405_v24, %v2477_v46  ;;  %v2387_v40 = vadd.f32 %v4384_v15, %v2274_v43  ;;  %v2506_v20 = vsel %vm2442_vm6, %v2397_v57, %v2474_v31 }
 0x286   : > { %v2531_v21 = vpack.c.bf16 %v2514_v36, %v2512_v39  ;;  %v2391_v3 = vadd.f32 %v4388_v0, %v2278_v41  ;;  %v2507_v42 = vsel %vm2443_vm7, %v2401_v22, %v2475_v49  ;;  %v2383_v45 = vadd.f32 %v4376_v5, %v2270_v17 }
 0x287   : > { %v2528_v18 = vpack.c.bf16 %v2509_v1, %v2507_v42  ;;  %v2504_v2 = vsel %vm2440_vm8, %v2393_v32, %v2472_v44  ;;  %v2473_v50 = vmul.f32 0.2, %v2395_v7  ;;  %v2470_v61 = vmul.f32 0.2, %v2387_v40 }
 0x288   : > { %2567 = vmatprep.subr.bf16.mxu0 %v2531_v21  ;;  %v2527_v60 = vpack.c.bf16 %v2506_v20, %v2504_v2  ;;  %vm2441_vm9 = vcmp.gt.f32.partialorder %v2395_v7, 0.0  ;;  %v2268_v46 = vadd.f32 %v4364_v8, %v4287_v38  ;;  %vm2438_vm10 = vcmp.gt.f32.partialorder %v2387_v40, 0.0  ;;  %v4588_v21 = vld [vmem:[#allocation16_spill] sm:$0xff] }
 0x289   : > { %2568 = vmatpush1.bf16.xpose.msra.mxu0 %v2530_v9  ;;  %v2471_v43 = vmul.f32 0.2, %v2391_v3  ;;  %v2260_v5 = vadd.f32 %v4349_v34, %v4291_v56  ;;  %v2468_v15 = vmul.f32 0.2, %v2383_v45  ;;  %vm2439_vm11 = vcmp.gt.f32.partialorder %v2391_v3, 0.0 }
 0x28a   : > { %2569 = vmatprep.subr.bf16.mxu0 %v2529_v28  ;;  %v2272_v28 = vadd.f32 %v4378_v6, %v4287_v38  ;;  %vm2436_vm12 = vcmp.gt.f32.partialorder %v2383_v45, 0.0  ;;  %v2505_v0 = vsel %vm2441_vm9, %v2395_v7, %v2473_v50  ;;  %v2377_v37 = vadd.f32 %v4362_v14, %v2264_v48 }
 0x28b   : > { %v2502_v59 = vsel %vm2438_vm10, %v2387_v40, %v2470_v61  ;;  %v2381_v25 = vadd.f32 %v4372_v53, %v2268_v46  ;;  %v2503_v4 = vsel %vm2439_vm11, %v2391_v3, %v2471_v43  ;;  %v2373_v38 = vadd.f32 %v4351_v58, %v2260_v5 }
 0x28c   : > { %v2385_v6 = vadd.f32 %v4380_v11, %v2272_v28  ;;  %v2526_v8 = vpack.c.bf16 %v2505_v0, %v2503_v4  ;;  %v2500_v35 = vsel %vm2436_vm12, %v2383_v45, %v2468_v15  ;;  %v2466_v26 = vmul.f32 0.2, %v2377_v37 }
 0x28d   : > { %v2525_v27 = vpack.c.bf16 %v2502_v59, %v2500_v35  ;;  %vm2434_vm14 = vcmp.gt.f32.partialorder %v2377_v37, 0.0  ;;  %v2467_v56 = vmul.f32 0.2, %v2381_v25  ;;  %v2464_v34 = vmul.f32 0.2, %v2373_v38 }
 0x28e   : > { %v2469_v62 = vmul.f32 0.2, %v2385_v6  ;;  %vm2437_vm13 = vcmp.gt.f32.partialorder %v2385_v6, 0.0  ;;  %vm2435_vm15 = vcmp.gt.f32.partialorder %v2381_v25, 0.0  ;;  %vm2432_vm0 = vcmp.gt.f32.partialorder %v2373_v38, 0.0 }
 0x28f   : > { %v2498_v11 = vsel %vm2434_vm14, %v2377_v37, %v2466_v26  ;;  %v2499_v24 = vsel %vm2435_vm15, %v2381_v25, %v2467_v56  ;;  %v2496_v51 = vsel %vm2432_vm0, %v2373_v38, %v2464_v34  ;;  %v4582_v58 = vpack.c.bf16 %v4368_v10, %v4366_v30  ;;  %v4590_v10 = vld [vmem:[#allocation4_spill] sm:$0xff] }
 0x290   : > { %v2501_v14 = vsel %vm2437_vm13, %v2385_v6, %v2469_v62  ;;  %v2523_v57 = vpack.c.bf16 %v2498_v11, %v2496_v51  ;;  %v4583_v39 = vpack.c.bf16 %v4355_v55, %v4353_v52  ;;  %v4584_v36 = vpack.c.bf16 %v4344_v54, %v4342_v63  ;;  %v4591_v52 = vld [vmem:[#allocation3_spill] sm:$0xff]  ;;  %v4593_v63 = vld [vmem:[#allocation5_spill] sm:$0xff]  ;;  %v4594_v54 = vld [vmem:[#allocation6_spill] sm:$0xff] }
 0x291   : > { %2570 = vmatpush1.bf16.xpose.msra.mxu0 %v2528_v18  ;;  %v2524_v53 = vpack.c.bf16 %v2501_v14, %v2499_v24  ;;  %v4585_v47 = vpack.c.bf16 %v4329_v12, %v4327_v33  ;;  %v4586_v22 = vpack.c.bf16 %v4320_v23, %v4318_v29  ;;  %v4589_v30 = vpack.c.bf16 %v4587_v19, %v4588_v21  ;;  %v4596_v12 = vld [vmem:[#allocation44_spill] sm:$0xff] }
 0x292   : > { %2571 = vmatprep.subr.bf16.mxu0 %v2527_v60  ;;  %v4592_v55 = vpack.c.bf16 %v4590_v10, %v4591_v52  ;;  %v4595_v32 = vrot.slane %v4593_v63, %v4594_v54 }
 0x299   : > { %2572 = vmatpush1.bf16.xpose.msra.mxu0 %v2526_v8 }
 0x29a   : > { %2573 = vmatprep.subr.bf16.mxu0 %v2525_v27 }
 0x2a1   : > { %2574 = vmatpush1.bf16.xpose.msra.mxu0 %v2524_v53 }
 0x2a2   : > { %2575 = vmatprep.subr.bf16.mxu0 %v2523_v57 }
 0x2a9   : > { %2576 = vmatpush1.bf16.xpose.msra.mxu0 %v4582_v58 }
 0x2aa   : > { %2577 = vmatprep.subr.bf16.mxu0 %v4583_v39 }
 0x2b1   : > { %2578 = vmatpush1.bf16.xpose.msra.mxu0 %v4584_v36 }
 0x2b2   : > { %2579 = vmatprep.subr.bf16.mxu0 %v4585_v47  ;;  %v2536_v33 = vpop.permute.xlu0 %2535 }
 0x2b3   : > { %v2541_v9 = vrot.slane %v2536_v33, %v4596_v12 }
 0x2b9   : > { %2580 = vmatpush1.bf16.xpose.msra.mxu0 %v4586_v22 }
 0x2ba   : > { %2581 = vmatprep.subr.bf16.mxu0 %v4589_v30 }
 0x2c1   : > { %2582 = vmatpush1.bf16.xpose.msra.mxu0 %v4592_v55 }
 0x2c8   : > { %2600 = vmatmul.mubr.bf16.vlgmr.msra.gmra.mxu0 %v4595_v32 }
 0x388   : > { %v2601_v13 = vpop.f32.mrf.mxu0 }
 0x389   : > { %v2602_v29 = vadd.f32 %v2601_v13, %v2541_v9 }
 0x38a   : > { %v2603_v23 = vpop.f32.mrf.mxu0 }
 0x38b   : > { %v2845_v16 = vmul.f32 -1.442695, %v2602_v29 }
 0x38c   : > { %v2604_v31 = vpop.f32.mrf.mxu0 }
 0x38d   : > { %2997 = vpow2.f32 %v2845_v16 }
 0x38e   : > { %v2605_v41 = vpop.f32.mrf.mxu0 }
 0x39a   : > { %v2998_v49 = vpop.eup %2997 }
 0x39b   : > { %v2610_v17 = vadd.f32 1.0, %v2998_v49 }
 0x39d   : > { %2999 = vrcp.f32 %v2610_v17 }
 0x3aa   : > { %v3000_v44 = vpop.eup %2999 }
 0x3ab   : > { %2613 = vst [vmem:[%s430_s15] sm:$0x1] %v3000_v44 }
 0x3ac PF: > { %s23_s19 = sadd.s32 1, %s3007_s19  }
 0x3ad   : > { %p20_p5 = scmp.ge.s32.totalorder %s23_s19, 4  }
 0x3af   :  { %22 = sbr.rel (!%p20_p5) target bundleno = 3 (0x3), region = 100 }

</bundles_post_ra>
